<compile_context>
chip_gen: v5e
topology: v5e:2x2
jax: 0.10.0
libtpu: 0.0.40
codegen_flags: <defaults>
</compile_context>

<pallas_src>
import math
import jax
import jax.numpy as jnp
from jax.experimental import pallas as pl
from jax.experimental.pallas import tpu as pltpu

SQRT_HALF = math.sqrt(0.5)
LANE = 128
SUBLANE = 8
NEG_BIG = -1e30


# ----------------------------- kernel helpers -----------------------------

def _dense(x3, w, b):
    """x3: (B,T,Cin) @ w: (Cin,Cout)[bf16] + b: (1,Cout)[f32] -> (B,T,Cout) f32."""
    B, T, Cin = x3.shape
    y = jnp.dot(x3.reshape(B * T, Cin).astype(w.dtype), w,
                preferred_element_type=jnp.float32) + b
    return y.reshape(B, T, w.shape[1])


def _conv_glu_layer(x, residual, keep, mprev, mnext, wc_ref, bc):
    """ConvTBC(k=3, pad=1) -> GLU -> scaled residual, in (B,T,C) layout.

        out[t] = x[t-1] @ W0 + x[t] @ W1 + x[t+1] @ W2 + bias
    Time shifts are XLU rolls with precomputed (T,1) boundary masks; the conv
    is three K=C MXU dots (no lane concat, so no (B,T,3C) f32 temp in VMEM).
    """
    x = x * keep  # masked_fill(padding, 0); identity when there is no padding
    # TODO(synk): F.dropout(p=0.1, training=True) before the conv is stochastic;
    # omitted here (equivalent to evaluating with dropout disabled).
    B, T, C = x.shape
    z_prev = pltpu.roll(x, 1, 1) * mprev        # x[t-1], zeroed at t == 0
    z_next = pltpu.roll(x, T - 1, 1) * mnext    # x[t+1], zeroed at t == T-1

    w0 = wc_ref[0]
    w1 = wc_ref[1]
    w2 = wc_ref[2]
    rows = B * T
    xb = x.reshape(rows, C).astype(w0.dtype)
    pb = z_prev.reshape(rows, C).astype(w0.dtype)
    nb = z_next.reshape(rows, C).astype(w0.dtype)
    y = (jnp.dot(pb, w0, preferred_element_type=jnp.float32)
         + jnp.dot(xb, w1, preferred_element_type=jnp.float32)
         + jnp.dot(nb, w2, preferred_element_type=jnp.float32))
    y = y.reshape(B, T, w0.shape[1]) + bc
    co = y.shape[-1] // 2
    g = y[..., :co] * jax.nn.sigmoid(y[..., co:])                # GLU (channels)
    return (g + residual) * SQRT_HALF


# --------------------------------- kernel ---------------------------------

def cnn_kernel(x_emb_ref, keep_ref,
               w1_ref, b1_ref,
               wc1_ref, bc1_ref,
               wc2_ref, bc2_ref,
               w2_ref, b2_ref,
               wt_ref, bt_ref,
               out_ref):
    x_emb = x_emb_ref[...]            # (bb, T, D) bf16 : token emb + position emb
    keep = keep_ref[...]              # (bb, T, 1) f32  : 1.0 = real token, 0.0 = pad
    # TODO(synk): dropout on the input embeddings (training=True) omitted.
    input_embedding = x_emb.astype(jnp.float32)
    _, T, _ = x_emb.shape

    # Boundary masks for the time-shift rolls, built once per grid step
    # (hoisted out of the conv layers; JAX does not CSE broadcast_in_dim).
    tidx = jax.lax.broadcasted_iota(jnp.int32, (T, 1), 0)
    mprev = (tidx > 0).astype(jnp.float32)        # zero the wrapped t == 0 row
    mnext = (tidx < T - 1).astype(jnp.float32)    # zero the wrapped t == T-1 row

    # fc1 (weight-normalized Linear; at init weight_norm is the identity).
    # TODO(synk): loading trained PyTorch weights requires folding g/||v||
    # into w1/w2/wc* first (weight_norm treated as identity here).
    x = _dense(x_emb, w1_ref[...], b1_ref[...])                  # (bb, T, 128)
    x_fc1 = x

    # NOTE: the reference forward never appends to `residuals`, so BOTH conv
    # layers use the fc1 output as their residual (proj is None: 128 == 128).
    x = _conv_glu_layer(x, x_fc1, keep, mprev, mnext, wc1_ref, bc1_ref[...])
    x = _conv_glu_layer(x, x_fc1, keep, mprev, mnext, wc2_ref, bc2_ref[...])

    # fc2 back to embedding_dim, mask, residual with the input embedding.
    x = _dense(x, w2_ref[...], b2_ref[...])                      # (bb, T, D)
    x = x * keep
    y = (x + input_embedding) * SQRT_HALF

    # hidden2tag (lane-padded to 128 output columns) + log_softmax.
    # Padded weight columns are 0 and padded bias entries are -1e30, so the
    # padded lanes contribute exp(.) == 0 and the real-tag log-softmax is
    # unchanged, while the store stays lane-dense (no masked vst).
    y = _dense(y, wt_ref[...], bt_ref[...])                      # (bb, T, 128)
    m = jnp.max(y, axis=-1, keepdims=True)
    s = y - m
    lse = jnp.log(jnp.sum(jnp.exp(s), axis=-1, keepdims=True))
    out_ref[...] = (s - lse).astype(out_ref.dtype)               # bf16 writeback


# -------------------------------- wrapper ---------------------------------

def _prep_params(params):
    """Cast / pad the weights the way the kernel wants them."""
    tags = params["wt"].shape[1]
    tp = ((tags + LANE - 1) // LANE) * LANE        # lane-padded tag dim
    wt_p = jnp.zeros((params["wt"].shape[0], tp), jnp.float32)
    wt_p = wt_p.at[:, :tags].set(params["wt"])
    bt_p = jnp.full((1, tp), NEG_BIG, jnp.float32)
    bt_p = bt_p.at[:, :tags].set(params["bt"])
    bf16 = jnp.bfloat16
    pw = dict(
        w1=params["w1"].astype(bf16), b1=params["b1"],
        wc1=params["wc1"].astype(bf16), bc1=params["bc1"],
        wc2=params["wc2"].astype(bf16), bc2=params["bc2"],
        w2=params["w2"].astype(bf16), b2=params["b2"],
        wt=wt_p.astype(bf16), bt=bt_p,
    )
    return pw, tags, tp


def _embed(X, params, padding_idx):
    """Embedding + learned-position gathers (plain-JAX glue). bf16 activations."""
    emb_w, pos_w = params["emb"], params["pos"]
    mask = (X != padding_idx)
    mask_i = mask.astype(jnp.int32)
    positions = jnp.cumsum(mask_i, axis=1) * mask_i + padding_idx
    # Defensive clamp (PyTorch would index-error past the position table).
    positions = jnp.minimum(positions, pos_w.shape[0] - 1)
    x_emb = (emb_w[X] + pos_w[positions]).astype(jnp.bfloat16)   # halve input DMA
    keep = mask.astype(jnp.float32)[:, :, None]                  # (B, T, 1)
    return x_emb, keep


def _choose_batch_block(B, Tp, target_rows=512, max_rows=2048):
    """Pick the batch block bb and (even) grid length.

    bb*Tp >= ~512 rows fills the MXU and amortizes the ~0.35 us per grid step;
    max_rows caps per-step VMEM so the tile also fits v7x's 64 MiB VMEM.
    """
    bb = max(1, min(target_rows, max_rows) // Tp)
    if bb >= B:
        # Tiny batch: prefer 2 grid steps (one per v7x TensorCore) over 1.
        bb = -(-B // 2) if B >= 2 else 1
    bb = min(bb, B)
    n_blocks = -(-B // bb)
    if n_blocks > 1 and n_blocks % 2 == 1:
        n_blocks += 1   # even grid length keeps v7x's two TensorCores balanced
    return bb, n_blocks


def cnn_forward(X, params, padding_idx=0, target_rows=512):
    B, T = X.shape

    # Pad T to a sublane multiple (keeps in-kernel reshapes relayout-free).
    # Extra timesteps are padding tokens: keep==0 zeroes them before each conv,
    # which matches conv_tbc's zero padding, so real-timestep outputs are
    # unchanged and the pad rows are sliced off below.
    Tp = max(SUBLANE, -(-T // SUBLANE) * SUBLANE)
    if Tp != T:
        X = jnp.pad(X, ((0, 0), (0, Tp - T)), constant_values=padding_idx)

    # Pad B up to a multiple of the batch block (never collapse to bb=1).
    bb, n_blocks = _choose_batch_block(B, Tp, target_rows)
    Bp = bb * n_blocks
    if Bp != B:
        X = jnp.pad(X, ((0, Bp - B), (0, 0)), constant_values=padding_idx)

    x_emb, keep = _embed(X, params, padding_idx)                 # bf16 / f32
    pw, tags, tp = _prep_params(params)
    D = x_emb.shape[-1]
    C = pw["w1"].shape[1]

    args = (x_emb, keep,
            pw["w1"], pw["b1"], pw["wc1"], pw["bc1"],
            pw["wc2"], pw["bc2"], pw["w2"], pw["b2"],
            pw["wt"], pw["bt"])

    def act_map(b):
        return (b, 0, 0)

    in_specs = [
        pl.BlockSpec((bb, Tp, D), act_map),
        pl.BlockSpec((bb, Tp, 1), act_map),
    ]
    # Weights/biases: full-array blocks with constant index maps stay
    # VMEM-resident across the grid; they total < 1 MiB, so even the default
    # double-buffering costs negligible VMEM on v7x.
    for a in args[2:]:
        nd = a.ndim
        in_specs.append(pl.BlockSpec(a.shape, lambda b, _nd=nd: (0,) * _nd))

    rows = Bp * Tp
    flops = 2 * rows * (D * C + 2 * 3 * C * (2 * C) + C * D + D * tp)
    transcendentals = rows * (2 * C + tp + 1)    # sigmoids + softmax exp/log
    bytes_accessed = (x_emb.size * 2 + keep.size * 4 + rows * tp * 2
                      + sum(int(a.size) * a.dtype.itemsize for a in args[2:]))

    out_padded = pl.pallas_call(
        cnn_kernel,
        out_shape=jax.ShapeDtypeStruct((Bp, Tp, tp), jnp.bfloat16),
        grid=(n_blocks,),
        in_specs=in_specs,
        out_specs=pl.BlockSpec((bb, Tp, tp), act_map),
        compiler_params=pltpu.CompilerParams(
            dimension_semantics=("parallel",),
            vmem_limit_bytes=48 * 1024 * 1024),   # headroom under v7x's 64 MiB
        cost_estimate=pl.CostEstimate(
            flops=flops, transcendentals=transcendentals,
            bytes_accessed=bytes_accessed),
    )(*args)

    # Strip batch/time/tag padding and return f32 log-probs.
    return out_padded[:B, :T, :tags].astype(jnp.float32)


# ---------------------- pure-JAX reference (validation) --------------------

def _ref_dense(x3, w, b):
    return jnp.dot(x3.astype(jnp.bfloat16), w.astype(jnp.bfloat16),
                   preferred_element_type=jnp.float32) + b


def _ref_conv_glu(x, residual, keep, wc, bc):
    x = x * keep
    B, T, C = x.shape
    xb = x.astype(jnp.bfloat16)
    w = wc.astype(jnp.bfloat16)
    yl = jnp.dot(xb, w[0], preferred_element_type=jnp.float32)
    yc = jnp.dot(xb, w[1], preferred_element_type=jnp.float32)
    yr = jnp.dot(xb, w[2], preferred_element_type=jnp.float32)
    zeros = jnp.zeros((B, 1, yl.shape[-1]), jnp.float32)
    # conv_tbc, kernel=3, padding=1:
    #   out[t] = x[t-1] @ W0 + x[t] @ W1 + x[t+1] @ W2 + bias
    y = (yc
         + jnp.concatenate([zeros, yl[:, :-1, :]], axis=1)
         + jnp.concatenate([yr[:, 1:, :], zeros], axis=1)
         + bc)
    co = y.shape[-1] // 2
    g = y[..., :co] * jax.nn.sigmoid(y[..., co:])
    return (g + residual) * SQRT_HALF


def cnn_forward_ref(X, params, padding_idx=0):
    """Eval-mode CNNModel.forward in pure JAX (same bf16 matmul casting)."""
    x_emb_bf, keep = _embed(X, params, padding_idx)
    x_emb = x_emb_bf.astype(jnp.float32)

    x = _ref_dense(x_emb_bf, params["w1"], params["b1"])
    x_fc1 = x
    x = _ref_conv_glu(x, x_fc1, keep, params["wc1"], params["bc1"])
    x = _ref_conv_glu(x, x_fc1, keep, params["wc2"], params["bc2"])
    x = _ref_dense(x, params["w2"], params["b2"])
    x = x * keep
    y = (x + x_emb) * SQRT_HALF
    y = _ref_dense(y, params["wt"], params["bt"])
    return jax.nn.log_softmax(y, axis=-1)


# ----------------------------- parameter init -----------------------------

def init_params(key, vocab_size, embedding_dim, tags_size,
                conv_channels=128, kernel_size=3, max_positions=64, dropout=0.1):
    ks = jax.random.split(key, 10)
    D = embedding_dim

    emb = 0.1 * jax.random.normal(ks[0], (vocab_size, D), jnp.float32)
    emb = emb.at[0].set(0.0)                       # padding_idx row zeroed
    pos = 0.1 * jax.random.normal(ks[1], (max_positions, D), jnp.float32)
    pos = pos.at[0].set(0.0)

    # fc1: Linear(D, 128), std = sqrt((1 - dropout) / D), bias = 0
    w1 = (math.sqrt((1.0 - dropout) / D)
          * jax.random.normal(ks[2], (conv_channels, D), jnp.float32)).T
    b1 = jnp.zeros((1, conv_channels), jnp.float32)

    # ConvTBC(128 -> 256, k=3): std = sqrt(4*(1-dropout)/(k*in_ch)), bias = 0
    conv_std = math.sqrt(4.0 * (1.0 - dropout) / (kernel_size * conv_channels))
    wc1 = conv_std * jax.random.normal(
        ks[3], (kernel_size, conv_channels, 2 * conv_channels), jnp.float32)
    bc1 = jnp.zeros((1, 2 * conv_channels), jnp.float32)
    wc2 = conv_std * jax.random.normal(
        ks[4], (kernel_size, conv_channels, 2 * conv_channels), jnp.float32)
    bc2 = jnp.zeros((1, 2 * conv_channels), jnp.float32)

    # fc2: Linear(128, D), std = sqrt(1 / 128), bias = 0
    w2 = (math.sqrt(1.0 / conv_channels)
          * jax.random.normal(ks[5], (D, conv_channels), jnp.float32)).T
    b2 = jnp.zeros((1, D), jnp.float32)

    # hidden2tag: plain nn.Linear (deterministic synthetic init)
    bound = 1.0 / math.sqrt(D)
    wt = jax.random.uniform(ks[6], (D, tags_size), jnp.float32, -bound, bound)
    bt = jax.random.uniform(ks[7], (1, tags_size), jnp.float32, -bound, bound)

    return dict(emb=emb, pos=pos, w1=w1, b1=b1, wc1=wc1, bc1=bc1,
                wc2=wc2, bc2=bc2, w2=w2, b2=b2, wt=wt, bt=bt)


if __name__ == "__main__":
    key = jax.random.PRNGKey(0)
    B, T = 2, 8
    vocab_size, embedding_dim, tags_size = 50, 32, 8

    pkey, xkey = jax.random.split(key)
    params = init_params(pkey, vocab_size, embedding_dim, tags_size)

    # token ids in [1, vocab); second sequence padded (token 0) at the tail
    X = jax.random.randint(xkey, (B, T), 1, vocab_size, dtype=jnp.int32)
    X = X.at[1, 5:].set(0)

    out = cnn_forward(X, params)
    out = jax.block_until_ready(out)

    assert out.shape == (B, T, tags_size)
    assert bool(jnp.all(jnp.isfinite(out)))
    # log_softmax property: logsumexp over the (real) tag axis must be ~0
    # (bf16 writeback -> loose tolerance).
    lse = jnp.log(jnp.sum(jnp.exp(out), axis=-1))
    assert bool(jnp.all(jnp.abs(lse) < 3e-2)), float(jnp.max(jnp.abs(lse)))

    # Cross-check against a pure-JAX reference of the same (eval-mode) forward.
    ref = cnn_forward_ref(X, params)
    err = float(jnp.max(jnp.abs(out - ref)))
    assert err < 3e-2, f"kernel/reference mismatch: max abs err = {err}"

    print("KERNEL_OK")
</pallas_src>

<mosaic_0001>
module attributes {stable_mosaic.version = 11 : i64} {
  func.func @cnn_kernel(%arg0: i32, %arg1: memref<1x8x32xbf16, #tpu.memory_space<vmem>>, %arg2: memref<1x8x1xf32, #tpu.memory_space<vmem>>, %arg3: memref<32x128xbf16, #tpu.memory_space<vmem>>, %arg4: memref<1x128xf32, #tpu.memory_space<vmem>>, %arg5: memref<3x128x256xbf16, #tpu.memory_space<vmem>>, %arg6: memref<1x256xf32, #tpu.memory_space<vmem>>, %arg7: memref<3x128x256xbf16, #tpu.memory_space<vmem>>, %arg8: memref<1x256xf32, #tpu.memory_space<vmem>>, %arg9: memref<128x32xbf16, #tpu.memory_space<vmem>>, %arg10: memref<1x32xf32, #tpu.memory_space<vmem>>, %arg11: memref<32x128xbf16, #tpu.memory_space<vmem>>, %arg12: memref<1x128xf32, #tpu.memory_space<vmem>>, %arg13: memref<1x8x128xbf16, #tpu.memory_space<vmem>>) attributes {dimension_semantics = [#tpu.dimension_semantics<parallel>], iteration_bounds = array<i64: 2>, scalar_prefetch = 0 : i64, scratch_operands = 0 : i64, tpu.core_type = #tpu.core_type<tc>, window_params = [{transform_indices = @transform_0, window_bounds = array<i64: 1, 8, 32>}, {transform_indices = @transform_1, window_bounds = array<i64: 1, 8, 1>}, {pipeline_mode = #tpu.pipeline_mode<synchronous>, transform_indices = @transform_2, window_bounds = array<i64: 32, 128>}, {pipeline_mode = #tpu.pipeline_mode<synchronous>, transform_indices = @transform_3, window_bounds = array<i64: 1, 128>}, {pipeline_mode = #tpu.pipeline_mode<synchronous>, transform_indices = @transform_4, window_bounds = array<i64: 3, 128, 256>}, {pipeline_mode = #tpu.pipeline_mode<synchronous>, transform_indices = @transform_5, window_bounds = array<i64: 1, 256>}, {pipeline_mode = #tpu.pipeline_mode<synchronous>, transform_indices = @transform_6, window_bounds = array<i64: 3, 128, 256>}, {pipeline_mode = #tpu.pipeline_mode<synchronous>, transform_indices = @transform_7, window_bounds = array<i64: 1, 256>}, {pipeline_mode = #tpu.pipeline_mode<synchronous>, transform_indices = @transform_8, window_bounds = array<i64: 128, 32>}, {pipeline_mode = #tpu.pipeline_mode<synchronous>, transform_indices = @transform_9, window_bounds = array<i64: 1, 32>}, {pipeline_mode = #tpu.pipeline_mode<synchronous>, transform_indices = @transform_10, window_bounds = array<i64: 32, 128>}, {pipeline_mode = #tpu.pipeline_mode<synchronous>, transform_indices = @transform_11, window_bounds = array<i64: 1, 128>}, {transform_indices = @transform_12, window_bounds = array<i64: 1, 8, 128>}]} {
    %c0 = arith.constant 0 : index
    %c0_0 = arith.constant 0 : index
    %c0_1 = arith.constant 0 : index
    %0 = vector.load %arg1[%c0, %c0_0, %c0_1] : memref<1x8x32xbf16, #tpu.memory_space<vmem>>, vector<1x8x32xbf16>
    %c0_2 = arith.constant 0 : index
    %c0_3 = arith.constant 0 : index
    %c0_4 = arith.constant 0 : index
    %1 = vector.load %arg2[%c0_2, %c0_3, %c0_4] : memref<1x8x1xf32, #tpu.memory_space<vmem>>, vector<1x8x1xf32>
    %2 = arith.extf %0 : vector<1x8x32xbf16> to vector<1x8x32xf32>
    %3 = tpu.iota {dimensions = array<i32: 0>} : vector<8x1xi32>
    %c0_i32 = arith.constant 0 : i32
    %4 = vector.broadcast %c0_i32 : i32 to vector<8x1xi32>
    %5 = arith.cmpi sgt, %3, %4 : vector<8x1xi32>
    %6 = arith.extui %5 : vector<8x1xi1> to vector<8x1xi32>
    %7 = arith.sitofp %6 : vector<8x1xi32> to vector<8x1xf32>
    %c7_i32 = arith.constant 7 : i32
    %8 = vector.broadcast %c7_i32 : i32 to vector<8x1xi32>
    %9 = arith.cmpi slt, %3, %8 : vector<8x1xi32>
    %10 = arith.extui %9 : vector<8x1xi1> to vector<8x1xi32>
    %11 = arith.sitofp %10 : vector<8x1xi32> to vector<8x1xf32>
    %c0_5 = arith.constant 0 : index
    %c0_6 = arith.constant 0 : index
    %12 = vector.load %arg3[%c0_5, %c0_6] : memref<32x128xbf16, #tpu.memory_space<vmem>>, vector<32x128xbf16>
    %c0_7 = arith.constant 0 : index
    %c0_8 = arith.constant 0 : index
    %13 = vector.load %arg4[%c0_7, %c0_8] : memref<1x128xf32, #tpu.memory_space<vmem>>, vector<1x128xf32>
    %14 = vector.shape_cast %0 : vector<1x8x32xbf16> to vector<8x32xbf16>
    %cst = arith.constant dense<0.000000e+00> : vector<8x128xf32>
    %15 = tpu.matmul %14, %12, %cst {dimension_numbers = #tpu.dot_dimension_numbers<[1], [0], [0], [1], [0, 0, 1, 1], [], []>} : vector<8x32xbf16>, vector<32x128xbf16>, vector<8x128xf32> -> vector<8x128xf32>
    %16 = vector.broadcast %13 : vector<1x128xf32> to vector<8x128xf32>
    %17 = arith.addf %15, %16 : vector<8x128xf32>
    %18 = vector.shape_cast %17 : vector<8x128xf32> to vector<1x8x128xf32>
    %c0_9 = arith.constant 0 : index
    %c0_10 = arith.constant 0 : index
    %19 = vector.load %arg6[%c0_9, %c0_10] : memref<1x256xf32, #tpu.memory_space<vmem>>, vector<1x256xf32>
    %20 = vector.broadcast %1 : vector<1x8x1xf32> to vector<1x8x128xf32>
    %21 = arith.mulf %18, %20 : vector<1x8x128xf32>
    %c1_i32 = arith.constant 1 : i32
    %22 = tpu.dynamic_rotate %21 by %c1_i32 dim 1 : vector<1x8x128xf32>, i32 -> vector<1x8x128xf32>
    %23 = vector.shape_cast %7 : vector<8x1xf32> to vector<1x8x1xf32>
    %24 = vector.broadcast %23 : vector<1x8x1xf32> to vector<1x8x128xf32>
    %25 = arith.mulf %22, %24 : vector<1x8x128xf32>
    %c7_i32_11 = arith.constant 7 : i32
    %26 = tpu.dynamic_rotate %21 by %c7_i32_11 dim 1 : vector<1x8x128xf32>, i32 -> vector<1x8x128xf32>
    %27 = vector.shape_cast %11 : vector<8x1xf32> to vector<1x8x1xf32>
    %28 = vector.broadcast %27 : vector<1x8x1xf32> to vector<1x8x128xf32>
    %29 = arith.mulf %26, %28 : vector<1x8x128xf32>
    %c0_12 = arith.constant 0 : index
    %c0_13 = arith.constant 0 : index
    %c0_14 = arith.constant 0 : index
    %30 = vector.load %arg5[%c0_12, %c0_13, %c0_14] : memref<3x128x256xbf16, #tpu.memory_space<vmem>>, vector<1x128x256xbf16>
    %31 = vector.shape_cast %30 : vector<1x128x256xbf16> to vector<128x256xbf16>
    %c1 = arith.constant 1 : index
    %c0_15 = arith.constant 0 : index
    %c0_16 = arith.constant 0 : index
    %32 = vector.load %arg5[%c1, %c0_15, %c0_16] : memref<3x128x256xbf16, #tpu.memory_space<vmem>>, vector<1x128x256xbf16>
    %33 = vector.shape_cast %32 : vector<1x128x256xbf16> to vector<128x256xbf16>
    %c2 = arith.constant 2 : index
    %c0_17 = arith.constant 0 : index
    %c0_18 = arith.constant 0 : index
    %34 = vector.load %arg5[%c2, %c0_17, %c0_18] : memref<3x128x256xbf16, #tpu.memory_space<vmem>>, vector<1x128x256xbf16>
    %35 = vector.shape_cast %34 : vector<1x128x256xbf16> to vector<128x256xbf16>
    %36 = vector.shape_cast %21 : vector<1x8x128xf32> to vector<8x128xf32>
    %37 = arith.truncf %36 : vector<8x128xf32> to vector<8x128xbf16>
    %38 = vector.shape_cast %25 : vector<1x8x128xf32> to vector<8x128xf32>
    %39 = arith.truncf %38 : vector<8x128xf32> to vector<8x128xbf16>
    %40 = vector.shape_cast %29 : vector<1x8x128xf32> to vector<8x128xf32>
    %41 = arith.truncf %40 : vector<8x128xf32> to vector<8x128xbf16>
    %cst_19 = arith.constant dense<0.000000e+00> : vector<8x256xf32>
    %42 = tpu.matmul %39, %31, %cst_19 {dimension_numbers = #tpu.dot_dimension_numbers<[1], [0], [0], [1], [0, 0, 1, 1], [], []>} : vector<8x128xbf16>, vector<128x256xbf16>, vector<8x256xf32> -> vector<8x256xf32>
    %cst_20 = arith.constant dense<0.000000e+00> : vector<8x256xf32>
    %43 = tpu.matmul %37, %33, %cst_20 {dimension_numbers = #tpu.dot_dimension_numbers<[1], [0], [0], [1], [0, 0, 1, 1], [], []>} : vector<8x128xbf16>, vector<128x256xbf16>, vector<8x256xf32> -> vector<8x256xf32>
    %44 = arith.addf %42, %43 : vector<8x256xf32>
    %cst_21 = arith.constant dense<0.000000e+00> : vector<8x256xf32>
    %45 = tpu.matmul %41, %35, %cst_21 {dimension_numbers = #tpu.dot_dimension_numbers<[1], [0], [0], [1], [0, 0, 1, 1], [], []>} : vector<8x128xbf16>, vector<128x256xbf16>, vector<8x256xf32> -> vector<8x256xf32>
    %46 = arith.addf %44, %45 : vector<8x256xf32>
    %47 = vector.shape_cast %46 : vector<8x256xf32> to vector<1x8x256xf32>
    %48 = vector.shape_cast %19 : vector<1x256xf32> to vector<1x1x256xf32>
    %49 = vector.broadcast %48 : vector<1x1x256xf32> to vector<1x8x256xf32>
    %50 = arith.addf %47, %49 : vector<1x8x256xf32>
    %51 = vector.extract_strided_slice %50 {offsets = [0, 0, 0], sizes = [1, 8, 128], strides = [1, 1, 1]} : vector<1x8x256xf32> to vector<1x8x128xf32>
    %52 = vector.extract_strided_slice %50 {offsets = [0, 0, 128], sizes = [1, 8, 128], strides = [1, 1, 1]} : vector<1x8x256xf32> to vector<1x8x128xf32>
    %53 = arith.negf %52 : vector<1x8x128xf32>
    %54 = math.exp %53 : vector<1x8x128xf32>
    %cst_22 = arith.constant 1.000000e+00 : f32
    %55 = vector.broadcast %cst_22 : f32 to vector<1x8x128xf32>
    %56 = arith.addf %55, %54 : vector<1x8x128xf32>
    %57 = arith.divf %55, %56 : vector<1x8x128xf32>
    %58 = arith.mulf %51, %57 : vector<1x8x128xf32>
    %59 = arith.addf %58, %18 : vector<1x8x128xf32>
    %cst_23 = arith.constant 0.707106769 : f32
    %60 = vector.broadcast %cst_23 : f32 to vector<1x8x128xf32>
    %61 = arith.mulf %59, %60 : vector<1x8x128xf32>
    %c0_24 = arith.constant 0 : index
    %c0_25 = arith.constant 0 : index
    %62 = vector.load %arg8[%c0_24, %c0_25] : memref<1x256xf32, #tpu.memory_space<vmem>>, vector<1x256xf32>
    %63 = vector.broadcast %1 : vector<1x8x1xf32> to vector<1x8x128xf32>
    %64 = arith.mulf %61, %63 : vector<1x8x128xf32>
    %c1_i32_26 = arith.constant 1 : i32
    %65 = tpu.dynamic_rotate %64 by %c1_i32_26 dim 1 : vector<1x8x128xf32>, i32 -> vector<1x8x128xf32>
    %66 = vector.shape_cast %7 : vector<8x1xf32> to vector<1x8x1xf32>
    %67 = vector.broadcast %66 : vector<1x8x1xf32> to vector<1x8x128xf32>
    %68 = arith.mulf %65, %67 : vector<1x8x128xf32>
    %c7_i32_27 = arith.constant 7 : i32
    %69 = tpu.dynamic_rotate %64 by %c7_i32_27 dim 1 : vector<1x8x128xf32>, i32 -> vector<1x8x128xf32>
    %70 = vector.shape_cast %11 : vector<8x1xf32> to vector<1x8x1xf32>
    %71 = vector.broadcast %70 : vector<1x8x1xf32> to vector<1x8x128xf32>
    %72 = arith.mulf %69, %71 : vector<1x8x128xf32>
    %c0_28 = arith.constant 0 : index
    %c0_29 = arith.constant 0 : index
    %c0_30 = arith.constant 0 : index
    %73 = vector.load %arg7[%c0_28, %c0_29, %c0_30] : memref<3x128x256xbf16, #tpu.memory_space<vmem>>, vector<1x128x256xbf16>
    %74 = vector.shape_cast %73 : vector<1x128x256xbf16> to vector<128x256xbf16>
    %c1_31 = arith.constant 1 : index
    %c0_32 = arith.constant 0 : index
    %c0_33 = arith.constant 0 : index
    %75 = vector.load %arg7[%c1_31, %c0_32, %c0_33] : memref<3x128x256xbf16, #tpu.memory_space<vmem>>, vector<1x128x256xbf16>
    %76 = vector.shape_cast %75 : vector<1x128x256xbf16> to vector<128x256xbf16>
    %c2_34 = arith.constant 2 : index
    %c0_35 = arith.constant 0 : index
    %c0_36 = arith.constant 0 : index
    %77 = vector.load %arg7[%c2_34, %c0_35, %c0_36] : memref<3x128x256xbf16, #tpu.memory_space<vmem>>, vector<1x128x256xbf16>
    %78 = vector.shape_cast %77 : vector<1x128x256xbf16> to vector<128x256xbf16>
    %79 = vector.shape_cast %64 : vector<1x8x128xf32> to vector<8x128xf32>
    %80 = arith.truncf %79 : vector<8x128xf32> to vector<8x128xbf16>
    %81 = vector.shape_cast %68 : vector<1x8x128xf32> to vector<8x128xf32>
    %82 = arith.truncf %81 : vector<8x128xf32> to vector<8x128xbf16>
    %83 = vector.shape_cast %72 : vector<1x8x128xf32> to vector<8x128xf32>
    %84 = arith.truncf %83 : vector<8x128xf32> to vector<8x128xbf16>
    %cst_37 = arith.constant dense<0.000000e+00> : vector<8x256xf32>
    %85 = tpu.matmul %82, %74, %cst_37 {dimension_numbers = #tpu.dot_dimension_numbers<[1], [0], [0], [1], [0, 0, 1, 1], [], []>} : vector<8x128xbf16>, vector<128x256xbf16>, vector<8x256xf32> -> vector<8x256xf32>
    %cst_38 = arith.constant dense<0.000000e+00> : vector<8x256xf32>
    %86 = tpu.matmul %80, %76, %cst_38 {dimension_numbers = #tpu.dot_dimension_numbers<[1], [0], [0], [1], [0, 0, 1, 1], [], []>} : vector<8x128xbf16>, vector<128x256xbf16>, vector<8x256xf32> -> vector<8x256xf32>
    %87 = arith.addf %85, %86 : vector<8x256xf32>
    %cst_39 = arith.constant dense<0.000000e+00> : vector<8x256xf32>
    %88 = tpu.matmul %84, %78, %cst_39 {dimension_numbers = #tpu.dot_dimension_numbers<[1], [0], [0], [1], [0, 0, 1, 1], [], []>} : vector<8x128xbf16>, vector<128x256xbf16>, vector<8x256xf32> -> vector<8x256xf32>
    %89 = arith.addf %87, %88 : vector<8x256xf32>
    %90 = vector.shape_cast %89 : vector<8x256xf32> to vector<1x8x256xf32>
    %91 = vector.shape_cast %62 : vector<1x256xf32> to vector<1x1x256xf32>
    %92 = vector.broadcast %91 : vector<1x1x256xf32> to vector<1x8x256xf32>
    %93 = arith.addf %90, %92 : vector<1x8x256xf32>
    %94 = vector.extract_strided_slice %93 {offsets = [0, 0, 0], sizes = [1, 8, 128], strides = [1, 1, 1]} : vector<1x8x256xf32> to vector<1x8x128xf32>
    %95 = vector.extract_strided_slice %93 {offsets = [0, 0, 128], sizes = [1, 8, 128], strides = [1, 1, 1]} : vector<1x8x256xf32> to vector<1x8x128xf32>
    %96 = arith.negf %95 : vector<1x8x128xf32>
    %97 = math.exp %96 : vector<1x8x128xf32>
    %cst_40 = arith.constant 1.000000e+00 : f32
    %98 = vector.broadcast %cst_40 : f32 to vector<1x8x128xf32>
    %99 = arith.addf %98, %97 : vector<1x8x128xf32>
    %100 = arith.divf %98, %99 : vector<1x8x128xf32>
    %101 = arith.mulf %94, %100 : vector<1x8x128xf32>
    %102 = arith.addf %101, %18 : vector<1x8x128xf32>
    %cst_41 = arith.constant 0.707106769 : f32
    %103 = vector.broadcast %cst_41 : f32 to vector<1x8x128xf32>
    %104 = arith.mulf %102, %103 : vector<1x8x128xf32>
    %c0_42 = arith.constant 0 : index
    %c0_43 = arith.constant 0 : index
    %105 = vector.load %arg9[%c0_42, %c0_43] : memref<128x32xbf16, #tpu.memory_space<vmem>>, vector<128x32xbf16>
    %c0_44 = arith.constant 0 : index
    %c0_45 = arith.constant 0 : index
    %106 = vector.load %arg10[%c0_44, %c0_45] : memref<1x32xf32, #tpu.memory_space<vmem>>, vector<1x32xf32>
    %107 = vector.shape_cast %104 : vector<1x8x128xf32> to vector<8x128xf32>
    %108 = arith.truncf %107 : vector<8x128xf32> to vector<8x128xbf16>
    %cst_46 = arith.constant dense<0.000000e+00> : vector<8x32xf32>
    %109 = tpu.matmul %108, %105, %cst_46 {dimension_numbers = #tpu.dot_dimension_numbers<[1], [0], [0], [1], [0, 0, 1, 1], [], []>} : vector<8x128xbf16>, vector<128x32xbf16>, vector<8x32xf32> -> vector<8x32xf32>
    %110 = vector.broadcast %106 : vector<1x32xf32> to vector<8x32xf32>
    %111 = arith.addf %109, %110 : vector<8x32xf32>
    %112 = vector.shape_cast %111 : vector<8x32xf32> to vector<1x8x32xf32>
    %113 = vector.broadcast %1 : vector<1x8x1xf32> to vector<1x8x32xf32>
    %114 = arith.mulf %112, %113 : vector<1x8x32xf32>
    %115 = arith.addf %114, %2 : vector<1x8x32xf32>
    %cst_47 = arith.constant 0.707106769 : f32
    %116 = vector.broadcast %cst_47 : f32 to vector<1x8x32xf32>
    %117 = arith.mulf %115, %116 : vector<1x8x32xf32>
    %c0_48 = arith.constant 0 : index
    %c0_49 = arith.constant 0 : index
    %118 = vector.load %arg11[%c0_48, %c0_49] : memref<32x128xbf16, #tpu.memory_space<vmem>>, vector<32x128xbf16>
    %c0_50 = arith.constant 0 : index
    %c0_51 = arith.constant 0 : index
    %119 = vector.load %arg12[%c0_50, %c0_51] : memref<1x128xf32, #tpu.memory_space<vmem>>, vector<1x128xf32>
    %120 = vector.shape_cast %117 : vector<1x8x32xf32> to vector<8x32xf32>
    %121 = arith.truncf %120 : vector<8x32xf32> to vector<8x32xbf16>
    %cst_52 = arith.constant dense<0.000000e+00> : vector<8x128xf32>
    %122 = tpu.matmul %121, %118, %cst_52 {dimension_numbers = #tpu.dot_dimension_numbers<[1], [0], [0], [1], [0, 0, 1, 1], [], []>} : vector<8x32xbf16>, vector<32x128xbf16>, vector<8x128xf32> -> vector<8x128xf32>
    %123 = vector.broadcast %119 : vector<1x128xf32> to vector<8x128xf32>
    %124 = arith.addf %122, %123 : vector<8x128xf32>
    %125 = vector.shape_cast %124 : vector<8x128xf32> to vector<1x8x128xf32>
    %cst_53 = arith.constant dense<0xFF800000> : vector<1x8xf32>
    %126 = vector.multi_reduction <maximumf>, %125, %cst_53 [2] : vector<1x8x128xf32> to vector<1x8xf32>
    %127 = vector.shape_cast %126 : vector<1x8xf32> to vector<1x8x1xf32>
    %128 = vector.broadcast %127 : vector<1x8x1xf32> to vector<1x8x128xf32>
    %129 = arith.subf %125, %128 : vector<1x8x128xf32>
    %130 = math.exp %129 : vector<1x8x128xf32>
    %cst_54 = arith.constant dense<0.000000e+00> : vector<1x8xf32>
    %131 = vector.multi_reduction <add>, %130, %cst_54 [2] : vector<1x8x128xf32> to vector<1x8xf32>
    %132 = vector.shape_cast %131 : vector<1x8xf32> to vector<1x8x1xf32>
    %133 = math.log %132 : vector<1x8x1xf32>
    %134 = vector.broadcast %133 : vector<1x8x1xf32> to vector<1x8x128xf32>
    %135 = arith.subf %129, %134 : vector<1x8x128xf32>
    %136 = arith.truncf %135 : vector<1x8x128xf32> to vector<1x8x128xbf16>
    %c0_55 = arith.constant 0 : index
    %c0_56 = arith.constant 0 : index
    %c0_57 = arith.constant 0 : index
    %137 = vector.load %arg13[%c0_55, %c0_56, %c0_57] : memref<1x8x128xbf16, #tpu.memory_space<vmem>>, vector<1x8x128xbf16>
    tpu.vector_store %arg13[%c0_55, %c0_56, %c0_57], %136 {strides = array<i32>} : memref<1x8x128xbf16, #tpu.memory_space<vmem>>, vector<1x8x128xbf16>,
    return
  }
  func.func @transform_0(%arg0: i32) -> (i32, i32, i32) {
    %c0_i32 = arith.constant 0 : i32
    %c0_i32_0 = arith.constant 0 : i32
    %c0_i32_1 = arith.constant 0 : i32
    return %arg0, %c0_i32, %c0_i32_0 : i32, i32, i32
  }
  func.func @transform_1(%arg0: i32) -> (i32, i32, i32) {
    %c0_i32 = arith.constant 0 : i32
    %c0_i32_0 = arith.constant 0 : i32
    %c0_i32_1 = arith.constant 0 : i32
    return %arg0, %c0_i32, %c0_i32_0 : i32, i32, i32
  }
  func.func @transform_2(%arg0: i32) -> (i32, i32) {
    %c0_i32 = arith.constant 0 : i32
    %c0_i32_0 = arith.constant 0 : i32
    %c0_i32_1 = arith.constant 0 : i32
    return %c0_i32, %c0_i32_0 : i32, i32
  }
  func.func @transform_3(%arg0: i32) -> (i32, i32) {
    %c0_i32 = arith.constant 0 : i32
    %c0_i32_0 = arith.constant 0 : i32
    %c0_i32_1 = arith.constant 0 : i32
    return %c0_i32, %c0_i32_0 : i32, i32
  }
  func.func @transform_4(%arg0: i32) -> (i32, i32, i32) {
    %c0_i32 = arith.constant 0 : i32
    %c0_i32_0 = arith.constant 0 : i32
    %c0_i32_1 = arith.constant 0 : i32
    %c0_i32_2 = arith.constant 0 : i32
    return %c0_i32, %c0_i32_0, %c0_i32_1 : i32, i32, i32
  }
  func.func @transform_5(%arg0: i32) -> (i32, i32) {
    %c0_i32 = arith.constant 0 : i32
    %c0_i32_0 = arith.constant 0 : i32
    %c0_i32_1 = arith.constant 0 : i32
    return %c0_i32, %c0_i32_0 : i32, i32
  }
  func.func @transform_6(%arg0: i32) -> (i32, i32, i32) {
    %c0_i32 = arith.constant 0 : i32
    %c0_i32_0 = arith.constant 0 : i32
    %c0_i32_1 = arith.constant 0 : i32
    %c0_i32_2 = arith.constant 0 : i32
    return %c0_i32, %c0_i32_0, %c0_i32_1 : i32, i32, i32
  }
  func.func @transform_7(%arg0: i32) -> (i32, i32) {
    %c0_i32 = arith.constant 0 : i32
    %c0_i32_0 = arith.constant 0 : i32
    %c0_i32_1 = arith.constant 0 : i32
    return %c0_i32, %c0_i32_0 : i32, i32
  }
  func.func @transform_8(%arg0: i32) -> (i32, i32) {
    %c0_i32 = arith.constant 0 : i32
    %c0_i32_0 = arith.constant 0 : i32
    %c0_i32_1 = arith.constant 0 : i32
    return %c0_i32, %c0_i32_0 : i32, i32
  }
  func.func @transform_9(%arg0: i32) -> (i32, i32) {
    %c0_i32 = arith.constant 0 : i32
    %c0_i32_0 = arith.constant 0 : i32
    %c0_i32_1 = arith.constant 0 : i32
    return %c0_i32, %c0_i32_0 : i32, i32
  }
  func.func @transform_10(%arg0: i32) -> (i32, i32) {
    %c0_i32 = arith.constant 0 : i32
    %c0_i32_0 = arith.constant 0 : i32
    %c0_i32_1 = arith.constant 0 : i32
    return %c0_i32, %c0_i32_0 : i32, i32
  }
  func.func @transform_11(%arg0: i32) -> (i32, i32) {
    %c0_i32 = arith.constant 0 : i32
    %c0_i32_0 = arith.constant 0 : i32
    %c0_i32_1 = arith.constant 0 : i32
    return %c0_i32, %c0_i32_0 : i32, i32
  }
  func.func @transform_12(%arg0: i32) -> (i32, i32, i32) {
    %c0_i32 = arith.constant 0 : i32
    %c0_i32_0 = arith.constant 0 : i32
    %c0_i32_1 = arith.constant 0 : i32
    return %arg0, %c0_i32, %c0_i32_0 : i32, i32, i32
  }
}

</mosaic_0001>

<bundles_post_ra>
// kernel: tpu_custom_call.1
= control target key start
LH: loop header
LB: loop body
LE: loop exit
PB: predicated region body
PF: predicated region fallthrough
CT: control target
= control target key end

     0   :  { %17 = vsyncpa [#allocation3], 0  ;;  %s2627_s0 = inlined_call_operand.vmem [shape: bf16[2,8,32], index: 0, kind: input, shape index: {}]   ;;  %s2628_s1 = inlined_call_operand.vmem [shape: f32[2,8,1], index: 1, kind: input, shape index: {}]   ;;  %s2629_s2 = inlined_call_operand.vmem [shape: bf16[32,128], index: 2, kind: input, shape index: {}]   ;;  %s2630_s3 = inlined_call_operand.vmem [shape: f32[1,128], index: 3, kind: input, shape index: {}]   ;;  %s2631_s4 = inlined_call_operand.hbm [shape: bf16[3,128,256], index: 4, kind: input, shape index: {}]   ;;  %s2632_s5 = inlined_call_operand.vmem [shape: f32[1,256], index: 5, kind: input, shape index: {}]   ;;  %s2633_s6 = inlined_call_operand.hbm [shape: bf16[3,128,256], index: 6, kind: input, shape index: {}]   ;;  %s2634_s7 = inlined_call_operand.vmem [shape: f32[1,256], index: 7, kind: input, shape index: {}]   ;;  %s2635_s8 = inlined_call_operand.vmem [shape: bf16[128,32], index: 8, kind: input, shape index: {}]   ;;  %s2636_s9 = inlined_call_operand.vmem [shape: f32[1,32], index: 9, kind: input, shape index: {}]   ;;  %s2637_s10 = inlined_call_operand.vmem [shape: bf16[32,128], index: 10, kind: input, shape index: {}]   ;;  %s2638_s11 = inlined_call_operand.vmem [shape: f32[1,128], index: 11, kind: input, shape index: {}]   ;;  %s2639_s12 = inlined_call_operand.hbm [shape: bf16[2,8,128], index: 12, kind: output, shape index: {}]  }
   0x1   :  { %18 = vsyncpa [#allocation6], 0 }
   0x2   :  { %19 = vsyncpa [#allocation4], 0 }
   0x3   :  { %21 = vsyncpa [#allocation4 + $0x1], 0  ;;  %s2418_s21 = smov 0   ;;  %s2420_s22 = smov 0  }
   0x4   :  { %s2422_s23 = smov 0   ;;  %s2424_s24 = smov 0  }
   0x5 LB: > { %2643 = sst [smem:[#allocation11_spill]] %s2341_s23  ;;  %s2439_s25 = sadd.s32 4294967295, %s2345_s24   ;;  %s2345_s24 = sphi %s2424_s24, %s2649_s24   ;;  %s2341_s23 = sphi %s2422_s23, %s2651_s23   ;;  %s2337_s22 = sphi %s2420_s22, %s2653_s22   ;;  %s2333_s21 = sphi %s2418_s21, %s2652_s21  }
   0x6   : > { %s1573_s26 = sadd.s32 4294967294, %s2345_s24   ;;  %s2443_s27 = sadd.s32 1, %s2345_s24  }
   0x7   : > { %2644 = sst [smem:[#allocation12_spill]] %s2443_s27  ;;  %s296_s28 = sadd.s32 1, %s2341_s23 }
   0x8   : > { %s293_s29 = ssub.s32 %s2345_s24, %s2443_s27  ;;  %p306_p0 = scmp.ne.s32.totalorder %s2341_s23, %s2337_s22 }
   0x9   : > { %p294_p1 = scmp.eq.s32.totalorder %s293_s29, 0  ;;  %p307_p2 = scmp.eq.s32.totalorder %s2439_s25, 1 }
   0xa   : > { %p312_p3 = scmp.ne.s32.totalorder %s2337_s22, %s2333_s21  ;;  %p313_p4 = scmp.eq.s32.totalorder %s1573_s26, 1 }
   0xb   : > { %s2454_s30 = scalar_select %p294_p1, %s2341_s23, %s296_s28  }
   0xc   : > { %p2456_p5 = por %p307_p2, %p306_p0  ;;  %p2460_p6 = por %p313_p4, %p312_p3 }
   0xd   : > { %2645 = sst [smem:[#allocation13_spill]] %s2454_s30  ;;  %p1574_p7 = scmp.ge.s32.totalorder %s2345_s24, 1 }
   0xe   : > { %p320_p8 = scmp.lt.s32.totalorder %s2345_s24, 3  ;;  %p2155_p9 = scmp.eq.s32.totalorder %s2439_s25, 0 }
   0xf   : > { %s337_s18 = sshll.u32 %s2631_s4, 4  ;;  %s2347_s19 = smov [#allocation2]   ;;  %s338_s18 = int_to_ptr.hbm [resolvable:$true] %s337_s18 }
  0x10   : > { %p2467_p10 = pnand %p1574_p7, %p320_p8  ;;  %s339_s20 = sshll.u32 %s2347_s19, 4  ;;  %s340_s20 = int_to_ptr.vmem [resolvable:$true] %s339_s20 }
  0x11   : > { %s354_s29 = sshll.u32 %s2633_s6, 4  ;;  %s2348_s30 = smov 128   ;;  %s355_s29 = int_to_ptr.hbm [resolvable:$true] %s354_s29 }
  0x12   : > { %p2144_p11 = pneg %p2467_p10  ;;  %s2349_s23 = smov 8  }
  0x13   : > { %s2350_s27 = smov [#allocation5]   ;;  %401 = sbr.rel (%p2467_p10) target bundleno = 1068 (0x42c), region = 68 }
  0x14   : > { %p2145_p12 = pnand %p2155_p9, %p2144_p11  ;;  %s356_s16 = sshll.u32 %s2350_s27, 4  ;;  %s357_s16 = int_to_ptr.vmem [resolvable:$true] %s356_s16 }
  0x16   : > { %2147 = dma.hbm_to_vmem [thread:$0]  (!%p2145_p12), %s338_s18, 6144, %s340_s20, [#allocation3], %s2348_s30, %s2348_s30, %s2349_s23  }
  0x17   : > { %2150 = dma.hbm_to_vmem [thread:$0]  (!%p2145_p12), %s355_s29, 6144, %s357_s16, [#allocation6], %s2348_s30, %s2348_s30, %s2349_s23  }
  0x18   : > { %2320 = dma.done.wait (%p2155_p9), [#allocation3], 6144  }
  0x19   : > { %2322 = vsyncadd (%p2155_p9), [#allocation3], 4294961152 }
  0x1a   : > { %2324 = dma.done.wait (%p2155_p9), [#allocation6], 6144  }
  0x1b   : > { %2326 = vsyncadd (%p2155_p9), [#allocation6], 4294961152  ;;  %p452_p13 = scmp.lt.s32.totalorder %s2439_s25, 1  ;;  %v2351_v0 = vmov 0   ;;  %v2027_v1 = vld [vmem:[%s2629_s2 + $0x8] sm:$0xff]  ;;  %v2026_v2 = vld [vmem:[%s2629_s2] sm:$0xff] }
  0x1c   : > { %2198 = vset.pattern.permute.xlu0 %v2351_v0  ;;  %v1653_v4 = vld [vmem:[#allocation2 + $0xf0] sm:$0xf]  ;;  %v2059_v5 = vld [vmem:[#allocation2 + $0xf4] sm:$0xf0]  ;;  %502 = vmatpush.bf16.msra.mxu0 %v2027_v1  ;;  %v2058_v7 = vld [vmem:[#allocation2 + $0xf4] sm:$0xf] }
  0x1d   : > { %s453_s23 = scalar_select %p452_p13, %s2439_s25, 1  ;;  %v1654_v6 = vor.u32 %v2059_v5, %v1653_v4  ;;  %v1655_v8 = vld [vmem:[#allocation2 + $0xf8] sm:$0xf0]  ;;  %v1645_v9 = vld [vmem:[#allocation2 + $0xe0] sm:$0xf]  ;;  %vm492_vm0 = vcmask 261120  }
  0x1e   : > { %v1658_v10 = vor.u32 %v2058_v7, %v1655_v8  ;;  %v2057_v11 = vld [vmem:[#allocation2 + $0xe4] sm:$0xf0]  ;;  %v2056_v12 = vld [vmem:[#allocation2 + $0xe4] sm:$0xf]  ;;  %v1647_v13 = vld [vmem:[#allocation2 + $0xe8] sm:$0xf0] }
  0x1f   : > { %s1583_s27 = sshll.u32 %s453_s23, 3  ;;  %s1582_s28 = sshll.u32 %s453_s23, 2  ;;  %653 = vmatpush.bf16.msra.mxu1 %v1654_v6  ;;  %v1646_v14 = vor.u32 %v2057_v11, %v1645_v9  ;;  %v1650_v15 = vor.u32 %v2056_v12, %v1647_v13  ;;  %v1637_v16 = vld [vmem:[#allocation2 + $0xd0] sm:$0xf]  ;;  %v2055_v17 = vld [vmem:[#allocation2 + $0xd4] sm:$0xf0] }
  0x20   : > { %s459_s17 = scalar_lea.vmem %s2628_s1, %s1583_s27  ;;  %s2505_s27 = scalar_lea.vmem %s2627_s0, %s1582_s28  ;;  %666 = vmatpush.bf16.msra.mxu2 %v1658_v10  ;;  %503 = vmatpush.bf16.msra.mxu0 %v2026_v2  ;;  %v2054_v19 = vld [vmem:[#allocation2 + $0xd4] sm:$0xf]  ;;  %v1639_v20 = vld [vmem:[#allocation2 + $0xd8] sm:$0xf0]  ;;  %v1638_v21 = vor.u32 %v2055_v17, %v1637_v16  ;;  %v1717_v22 = vld [vmem:[#allocation2 + $0x70] sm:$0xf] }
  0x21   : > { %v462_v3 = vld [vmem:[%s459_s17] sm:$0xff]  ;;  %v2043_v23 = vld [vmem:[#allocation2 + $0x74] sm:$0xf0]  ;;  %v2042_v24 = vld [vmem:[#allocation2 + $0x74] sm:$0xf]  ;;  %v1642_v25 = vor.u32 %v2054_v19, %v1639_v20  ;;  %s2023_s29 = sshll.u32 %s2439_s25, 2 }
  0x22   : > { %512 = vperm.xlu0 %2198, %v462_v3   ;;  %v461_v18 = vld [vmem:[%s2505_s27] sm:$0xf]  ;;  %v2053_v27 = vld [vmem:[#allocation2 + $0xc4] sm:$0xf0]  ;;  %v1718_v28 = vor.u32 %v2043_v23, %v1717_v22  ;;  %v1719_v29 = vld [vmem:[#allocation2 + $0x78] sm:$0xf0]  ;;  %s1475_s30 = scalar_lea.hbm %s2639_s12, %s2023_s29 }
  0x23   : > { %654 = vmatpush.bf16.msra.mxu1 %v1646_v14  ;;  %1594 = vmatmul.msk.bf16.vlgmr.msra.gmra.mxu0 %vm492_vm0, %v461_v18  ;;  %v1629_v26 = vld [vmem:[#allocation2 + $0xc0] sm:$0xf]  ;;  %v2052_v30 = vld [vmem:[#allocation2 + $0xc4] sm:$0xf]  ;;  %v1631_v31 = vld [vmem:[#allocation2 + $0xc8] sm:$0xf0]  ;;  %v1722_v32 = vor.u32 %v2042_v24, %v1719_v29 }
  0x24   : > { %667 = vmatpush.bf16.msra.mxu2 %v1650_v15  ;;  %v1709_v33 = vld [vmem:[#allocation2 + $0x60] sm:$0xf]  ;;  %759 = vmatpush.bf16.msra.mxu3 %v1718_v28  ;;  %v2041_v34 = vld [vmem:[#allocation2 + $0x64] sm:$0xf0]  ;;  %v2040_v35 = vld [vmem:[#allocation2 + $0x64] sm:$0xf]  ;;  %v1630_v37 = vor.u32 %v2053_v27, %v1629_v26  ;;  %v1634_v42 = vor.u32 %v2052_v30, %v1631_v31 }
  0x25   : > { %v1711_v36 = vld [vmem:[#allocation2 + $0x68] sm:$0xf0]  ;;  %v1621_v38 = vld [vmem:[#allocation2 + $0xb0] sm:$0xf]  ;;  %v2051_v39 = vld [vmem:[#allocation2 + $0xb4] sm:$0xf0]  ;;  %772 = vmatpush.bf16.msrb.mxu0 %v1722_v32  ;;  %v1710_v40 = vor.u32 %v2041_v34, %v1709_v33 }
  0x26   : > { %v1714_v41 = vor.u32 %v2040_v35, %v1711_v36  ;;  %v2050_v43 = vld [vmem:[#allocation2 + $0xb4] sm:$0xf]  ;;  %v1701_v44 = vld [vmem:[#allocation2 + $0x50] sm:$0xf]  ;;  %v2039_v45 = vld [vmem:[#allocation2 + $0x54] sm:$0xf0]  ;;  %v1622_v50 = vor.u32 %v2051_v39, %v1621_v38 }
  0x27   : > { %655 = vmatpush.bf16.msra.mxu1 %v1638_v21  ;;  %v1623_v46 = vld [vmem:[#allocation2 + $0xb8] sm:$0xf0]  ;;  %v2038_v47 = vld [vmem:[#allocation2 + $0x54] sm:$0xf]  ;;  %v1702_v49 = vor.u32 %v2039_v45, %v1701_v44  ;;  %v1613_v51 = vld [vmem:[#allocation2 + $0xa0] sm:$0xf] }
  0x28   : > { %668 = vmatpush.bf16.msra.mxu2 %v1642_v25  ;;  %v1703_v48 = vld [vmem:[#allocation2 + $0x58] sm:$0xf0]  ;;  %760 = vmatpush.bf16.msra.mxu3 %v1710_v40  ;;  %v1693_v53 = vld [vmem:[#allocation2 + $0x40] sm:$0xf]  ;;  %v2037_v54 = vld [vmem:[#allocation2 + $0x44] sm:$0xf0]  ;;  %v1626_v55 = vor.u32 %v2050_v43, %v1623_v46 }
  0x29   : > { %773 = vmatpush.bf16.msrb.mxu0 %v1714_v41  ;;  %v1706_v52 = vor.u32 %v2038_v47, %v1703_v48  ;;  %v2049_v56 = vld [vmem:[#allocation2 + $0xa4] sm:$0xf0]  ;;  %v2036_v57 = vld [vmem:[#allocation2 + $0x44] sm:$0xf]  ;;  %v1695_v58 = vld [vmem:[#allocation2 + $0x48] sm:$0xf0]  ;;  %v1694_v63 = vor.u32 %v2037_v54, %v1693_v53 }
  0x2a   : > { %v2048_v59 = vld [vmem:[#allocation2 + $0xa4] sm:$0xf]  ;;  %v1615_v60 = vld [vmem:[#allocation2 + $0xa8] sm:$0xf0]  ;;  %v1605_v61 = vld [vmem:[#allocation2 + $0x90] sm:$0xf]  ;;  %v1614_v0 = vor.u32 %v2049_v56, %v1613_v51  ;;  %v1698_v2 = vor.u32 %v2036_v57, %v1695_v58 }
  0x2b   : > { %656 = vmatpush.bf16.msra.mxu1 %v1630_v37  ;;  %v2047_v62 = vld [vmem:[#allocation2 + $0x94] sm:$0xf0]  ;;  %v2046_v1 = vld [vmem:[#allocation2 + $0x94] sm:$0xf]  ;;  %v1685_v3 = vld [vmem:[#allocation2 + $0x30] sm:$0xf]  ;;  %v1618_v5 = vor.u32 %v2048_v59, %v1615_v60 }
  0x2c   : > { %669 = vmatpush.bf16.msra.mxu2 %v1634_v42  ;;  %761 = vmatpush.bf16.msra.mxu3 %v1702_v49  ;;  %v2035_v4 = vld [vmem:[#allocation2 + $0x34] sm:$0xf0]  ;;  %v2034_v6 = vld [vmem:[#allocation2 + $0x34] sm:$0xf]  ;;  %v1687_v7 = vld [vmem:[#allocation2 + $0x38] sm:$0xf0]  ;;  %v1606_v10 = vor.u32 %v2047_v62, %v1605_v61 }
  0x2d   : > { %774 = vmatpush.bf16.msrb.mxu0 %v1706_v52  ;;  %v1607_v8 = vld [vmem:[#allocation2 + $0x98] sm:$0xf0]  ;;  %v1686_v9 = vor.u32 %v2035_v4, %v1685_v3  ;;  %v1690_v11 = vor.u32 %v2034_v6, %v1687_v7  ;;  %v1597_v13 = vld [vmem:[#allocation2 + $0x80] sm:$0xf]  ;;  %v2045_v14 = vld [vmem:[#allocation2 + $0x84] sm:$0xf0] }
  0x2e   : > { %v1610_v12 = vor.u32 %v2046_v1, %v1607_v8  ;;  %v2044_v15 = vld [vmem:[#allocation2 + $0x84] sm:$0xf]  ;;  %v1599_v16 = vld [vmem:[#allocation2 + $0x88] sm:$0xf0]  ;;  %v1781_v17 = vld [vmem:[#allocation2 + $0x170] sm:$0xf]  ;;  %v1598_v21 = vor.u32 %v2045_v14, %v1597_v13 }
  0x2f   : > { %657 = vmatpush.bf16.msra.mxu1 %v1622_v50  ;;  %v2075_v18 = vld [vmem:[#allocation2 + $0x174] sm:$0xf0]  ;;  %v2074_v19 = vld [vmem:[#allocation2 + $0x174] sm:$0xf]  ;;  %v1783_v20 = vld [vmem:[#allocation2 + $0x178] sm:$0xf0]  ;;  %v1602_v22 = vor.u32 %v2044_v15, %v1599_v16 }
  0x30   : > { %670 = vmatpush.bf16.msra.mxu2 %v1626_v55  ;;  %762 = vmatpush.bf16.msra.mxu3 %v1694_v63  ;;  %v1782_v23 = vor.u32 %v2075_v18, %v1781_v17  ;;  %v1786_v24 = vor.u32 %v2074_v19, %v1783_v20  ;;  %v1773_v25 = vld [vmem:[#allocation2 + $0x160] sm:$0xf]  ;;  %v2073_v26 = vld [vmem:[#allocation2 + $0x164] sm:$0xf0]  ;;  %v2072_v27 = vld [vmem:[#allocation2 + $0x164] sm:$0xf] }
  0x31   : > { %775 = vmatpush.bf16.msrb.mxu0 %v1698_v2  ;;  %v1775_v28 = vld [vmem:[#allocation2 + $0x168] sm:$0xf0]  ;;  %v1774_v29 = vor.u32 %v2073_v26, %v1773_v25  ;;  %v1677_v31 = vld [vmem:[#allocation2 + $0x20] sm:$0xf]  ;;  %v2033_v32 = vld [vmem:[#allocation2 + $0x24] sm:$0xf0] }
  0x32   : > { %v1778_v30 = vor.u32 %v2072_v27, %v1775_v28  ;;  %v2032_v33 = vld [vmem:[#allocation2 + $0x24] sm:$0xf]  ;;  %v1678_v34 = vor.u32 %v2033_v32, %v1677_v31  ;;  %v1679_v35 = vld [vmem:[#allocation2 + $0x28] sm:$0xf0]  ;;  %v1765_v36 = vld [vmem:[#allocation2 + $0x150] sm:$0xf] }
  0x33   : > { %658 = vmatpush.bf16.msra.mxu1 %v1614_v0  ;;  %v2071_v37 = vld [vmem:[#allocation2 + $0x154] sm:$0xf0]  ;;  %v1682_v38 = vor.u32 %v2032_v33, %v1679_v35  ;;  %v2070_v40 = vld [vmem:[#allocation2 + $0x154] sm:$0xf]  ;;  %v1767_v41 = vld [vmem:[#allocation2 + $0x158] sm:$0xf0] }
  0x34   : > { %671 = vmatpush.bf16.msra.mxu2 %v1618_v5  ;;  %763 = vmatpush.bf16.msra.mxu3 %v1686_v9  ;;  %v1766_v39 = vor.u32 %v2071_v37, %v1765_v36  ;;  %v1770_v42 = vor.u32 %v2070_v40, %v1767_v41  ;;  %v1669_v43 = vld [vmem:[#allocation2 + $0x10] sm:$0xf]  ;;  %v2031_v44 = vld [vmem:[#allocation2 + $0x14] sm:$0xf0]  ;;  %v2030_v45 = vld [vmem:[#allocation2 + $0x14] sm:$0xf] }
  0x35   : > { %776 = vmatpush.bf16.msrb.mxu0 %v1690_v11  ;;  %v1670_v46 = vor.u32 %v2031_v44, %v1669_v43  ;;  %v1671_v47 = vld [vmem:[#allocation2 + $0x18] sm:$0xf0]  ;;  %v1757_v48 = vld [vmem:[#allocation2 + $0x140] sm:$0xf]  ;;  %v2069_v49 = vld [vmem:[#allocation2 + $0x144] sm:$0xf0] }
  0x36   : > { %v1674_v50 = vor.u32 %v2030_v45, %v1671_v47  ;;  %v1758_v51 = vor.u32 %v2069_v49, %v1757_v48  ;;  %v2068_v52 = vld [vmem:[#allocation2 + $0x144] sm:$0xf]  ;;  %v1759_v53 = vld [vmem:[#allocation2 + $0x148] sm:$0xf0]  ;;  %v1661_v55 = vld [vmem:[#allocation2] sm:$0xf] }
  0x37   : > { %659 = vmatpush.bf16.msra.mxu1 %v1606_v10  ;;  %v1762_v54 = vor.u32 %v2068_v52, %v1759_v53  ;;  %v2029_v56 = vld [vmem:[#allocation2 + $0x4] sm:$0xf0]  ;;  %v2028_v57 = vld [vmem:[#allocation2 + $0x4] sm:$0xf]  ;;  %v1663_v59 = vld [vmem:[#allocation2 + $0x8] sm:$0xf0] }
  0x38   : > { %672 = vmatpush.bf16.msra.mxu2 %v1610_v12  ;;  %764 = vmatpush.bf16.msra.mxu3 %v1678_v34  ;;  %v1662_v58 = vor.u32 %v2029_v56, %v1661_v55  ;;  %v1749_v60 = vld [vmem:[#allocation2 + $0x130] sm:$0xf]  ;;  %v2067_v61 = vld [vmem:[#allocation2 + $0x134] sm:$0xf0]  ;;  %v1666_v62 = vor.u32 %v2028_v57, %v1663_v59  ;;  %v2066_v0 = vld [vmem:[#allocation2 + $0x134] sm:$0xf] }
  0x39   : > { %777 = vmatpush.bf16.msrb.mxu0 %v1682_v38  ;;  %v1750_v63 = vor.u32 %v2067_v61, %v1749_v60  ;;  %v1751_v1 = vld [vmem:[#allocation2 + $0x138] sm:$0xf0]  ;;  %v1741_v3 = vld [vmem:[#allocation2 + $0x120] sm:$0xf]  ;;  %v2065_v4 = vld [vmem:[#allocation2 + $0x124] sm:$0xf0] }
  0x3a   : > { %v1754_v2 = vor.u32 %v2066_v0, %v1751_v1  ;;  %v1742_v5 = vor.u32 %v2065_v4, %v1741_v3  ;;  %v2064_v6 = vld [vmem:[#allocation2 + $0x124] sm:$0xf]  ;;  %v1743_v7 = vld [vmem:[#allocation2 + $0x128] sm:$0xf0]  ;;  %v1733_v9 = vld [vmem:[#allocation2 + $0x110] sm:$0xf] }
  0x3b   : > { %660 = vmatpush.bf16.msra.mxu1 %v1598_v21  ;;  %v1746_v8 = vor.u32 %v2064_v6, %v1743_v7  ;;  %v2063_v10 = vld [vmem:[#allocation2 + $0x114] sm:$0xf0]  ;;  %v2062_v11 = vld [vmem:[#allocation2 + $0x114] sm:$0xf]  ;;  %v1735_v12 = vld [vmem:[#allocation2 + $0x118] sm:$0xf0]  ;;  %v464_v21 = vlaneseq }
  0x3c   : > { %673 = vmatpush.bf16.msra.mxu2 %v1602_v22  ;;  %765 = vmatpush.bf16.msra.mxu3 %v1670_v46  ;;  %v1734_v13 = vor.u32 %v2063_v10, %v1733_v9  ;;  %v1738_v14 = vor.u32 %v2062_v11, %v1735_v12  ;;  %v1725_v15 = vld [vmem:[#allocation2 + $0x100] sm:$0xf]  ;;  %v2061_v16 = vld [vmem:[#allocation2 + $0x104] sm:$0xf0]  ;;  %v2060_v17 = vld [vmem:[#allocation2 + $0x104] sm:$0xf] }
  0x3d   : > { %778 = vmatpush.bf16.msrb.mxu0 %v1674_v50  ;;  %v1727_v18 = vld [vmem:[#allocation2 + $0x108] sm:$0xf0]  ;;  %v1726_v19 = vor.u32 %v2061_v16, %v1725_v15  ;;  %v2199_v22 = vld [vmem:[%s2630_s3] ss:$0 sm:$0xff]  ;;  %v2352_v28 = vmov 0.0   ;;  %s1479_s18 = sshll.u32 %s1475_s30, 4  ;;  %s1480_s18 = int_to_ptr.hbm [resolvable:$true] %s1479_s18 }
  0x3e   : > { %v1730_v20 = vor.u32 %v2060_v17, %v1727_v18  ;;  %v2107_v40 = vld [vmem:[#allocation5 + $0xf4] sm:$0xf0]  ;;  %v2106_v41 = vld [vmem:[#allocation5 + $0xf4] sm:$0xf]  ;;  %v1848_v43 = vld [vmem:[#allocation5 + $0xf8] sm:$0xf0] }
  0x3f   : > { %865 = vmatpush.bf16.msrb.mxu1 %v1782_v23  ;;  %v465_v23 = vshrl.u32 %v464_v21, 7  ;;  %v1851_v44 = vor.u32 %v2106_v41, %v1848_v43  ;;  %v1838_v45 = vld [vmem:[#allocation5 + $0xe0] sm:$0xf]  ;;  %v2105_v46 = vld [vmem:[#allocation5 + $0xe4] sm:$0xf0]  ;;  %s2289_s20 = sshra.s32 %s1480_s18, 4  ;;  %s2290_s20 = int_to_ptr.hbm [resolvable:$true] %s2289_s20 }
  0x40   : > { %878 = vmatpush.bf16.msrb.mxu2 %v1786_v24  ;;  %766 = vmatpush.bf16.msra.mxu3 %v1662_v58  ;;  %v2104_v47 = vld [vmem:[#allocation5 + $0xe4] sm:$0xf]  ;;  %v1839_v48 = vor.u32 %v2105_v46, %v1838_v45  ;;  %v1840_v49 = vld [vmem:[#allocation5 + $0xe8] sm:$0xf0]  ;;  %v2103_v52 = vld [vmem:[#allocation5 + $0xd4] sm:$0xf0]  ;;  %p2296_p3 = scmp.lt.s32.totalorder %s2290_s20, %s2639_s12 }
  0x41   : > { %779 = vmatpush.bf16.msrb.mxu0 %v1666_v62  ;;  %vm466_vm1 = vcmp.gt.s32.totalorder %v465_v23, 0  ;;  %vm469_vm2 = vcmp.lt.s32.totalorder %v465_v23, 7  ;;  %v1843_v50 = vor.u32 %v2104_v47, %v1840_v49  ;;  %v2102_v53 = vld [vmem:[#allocation5 + $0xd4] sm:$0xf]  ;;  %v1832_v55 = vld [vmem:[#allocation5 + $0xd8] sm:$0xf0] }
  0x42   : > { %v2521_v36 = vsel %vm469_vm2, 1.0, %v2352_v28  ;;  %v1835_v56 = vor.u32 %v2102_v53, %v1832_v55  ;;  %v1822_v57 = vld [vmem:[#allocation5 + $0xc0] sm:$0xf]  ;;  %v2101_v58 = vld [vmem:[#allocation5 + $0xc4] sm:$0xf0]  ;;  %s2291_s26 = scalar_lea.hbm %s2290_s20, 4 }
  0x43   : > { %866 = vmatpush.bf16.msrb.mxu1 %v1774_v29  ;;  %v2518_v29 = vsel %vm466_vm1, 1.0, %v2352_v28  ;;  %v2100_v59 = vld [vmem:[#allocation5 + $0xc4] sm:$0xf]  ;;  %v1823_v60 = vor.u32 %v2101_v58, %v1822_v57  ;;  %v1824_v61 = vld [vmem:[#allocation5 + $0xc8] sm:$0xf0]  ;;  %p2292_p0 = scmp.ne.s32.totalorder %s2290_s20, %s2291_s26  ;;  %s2295_s16 = scalar_lea.hbm %s2639_s12, 8 }
  0x44   : > { %879 = vmatpush.bf16.msrb.mxu2 %v1778_v30  ;;  %v1814_v0 = vld [vmem:[#allocation5 + $0xb0] sm:$0xf]  ;;  %v2099_v1 = vld [vmem:[#allocation5 + $0xb4] sm:$0xf0]  ;;  %v1816_v4 = vld [vmem:[#allocation5 + $0xb8] sm:$0xf0]  ;;  %p2297_p4 = scmp.lt.s32.totalorder %s2295_s16, %s2291_s26 }
  0x45   : > { %1074 = vmatpush.bf16.msra.mxu0 %v1851_v44  ;;  %v1815_v3 = vor.u32 %v2099_v1, %v1814_v0  ;;  %v2091_v6 = vld [vmem:[#allocation5 + $0x74] sm:$0xf0]  ;;  %v2090_v10 = vld [vmem:[#allocation5 + $0x74] sm:$0xf]  ;;  %v1912_v11 = vld [vmem:[#allocation5 + $0x78] sm:$0xf0]  ;;  %p2293_p1 = pnand %p2292_p0, %p2456_p5 }
  0x46   : > { %v1915_v12 = vor.u32 %v2090_v10, %v1912_v11  ;;  %v2097_v15 = vld [vmem:[#allocation5 + $0xa4] sm:$0xf0]  ;;  %v2096_v16 = vld [vmem:[#allocation5 + $0xa4] sm:$0xf]  ;;  %v1808_v18 = vld [vmem:[#allocation5 + $0xa8] sm:$0xf0]  ;;  %p2298_p7 = por %p2297_p4, %p2296_p3 }
  0x47   : > { %867 = vmatpush.bf16.msrb.mxu1 %v1766_v39  ;;  %v1846_v39 = vld [vmem:[#allocation5 + $0xf0] sm:$0xf]  ;;  %v2086_v43 = vld [vmem:[#allocation5 + $0x54] sm:$0xf]  ;;  %v1896_v44 = vld [vmem:[#allocation5 + $0x58] sm:$0xf0]  ;;  %p2294_p2 = pneg %p2293_p1 }
  0x48   : > { %880 = vmatpush.bf16.msrb.mxu2 %v1770_v42  ;;  %v1847_v42 = vor.u32 %v2107_v40, %v1846_v39  ;;  %v2535_v40 = vld [vmem:[%s2632_s5] sm:$0x3]  ;;  %v1899_v46 = vor.u32 %v2086_v43, %v1896_v44  ;;  %v2093_v49 = vld [vmem:[#allocation5 + $0x84] sm:$0xf0]  ;;  %v2084_v58 = vld [vmem:[#allocation5 + $0x44] sm:$0xf] }
  0x49   : > { %1075 = vmatpush.bf16.msra.mxu0 %v1843_v50  ;;  %v895_v45 = vperm.slane %v2535_v40, 1  ;;  %v2092_v50 = vld [vmem:[#allocation5 + $0x84] sm:$0xf]  ;;  %v1886_v53 = vld [vmem:[#allocation5 + $0x40] sm:$0xf]  ;;  %p2299_p8 = pnand %p2298_p7, %p2294_p2 }
  0x4a   : > { %1061 = vmatpush.bf16.msrb.mxu3 %v1847_v42  ;;  %v2122_v0 = vld [vmem:[#allocation5 + $0x174] sm:$0xf]  ;;  %v1976_v1 = vld [vmem:[#allocation5 + $0x178] sm:$0xf0]  ;;  %v1966_v11 = vld [vmem:[#allocation5 + $0x160] sm:$0xf] }
  0x4b   : > { %868 = vmatpush.bf16.msrb.mxu1 %v1758_v51  ;;  %v1830_v51 = vld [vmem:[#allocation5 + $0xd0] sm:$0xf]  ;;  %v1880_v10 = vld [vmem:[#allocation5 + $0x38] sm:$0xf0]  ;;  %v1950_v43 = vld [vmem:[#allocation5 + $0x140] sm:$0xf] }
  0x4c   : > { %881 = vmatpush.bf16.msrb.mxu2 %v1762_v54  ;;  %v1831_v54 = vor.u32 %v2103_v52, %v1830_v51  ;;  %v1792_v52 = vld [vmem:[#allocation5 + $0x88] sm:$0xf0] }
  0x4d   : > { %1076 = vmatpush.bf16.msra.mxu0 %v1835_v56  ;;  %v1795_v56 = vor.u32 %v2092_v50, %v1792_v52 }
  0x4e   : > { %1062 = vmatpush.bf16.msrb.mxu3 %v1839_v48  ;;  %v1790_v48 = vld [vmem:[#allocation5 + $0x80] sm:$0xf] }
  0x4f   : > { %869 = vmatpush.bf16.msrb.mxu1 %v1750_v63  ;;  %v1827_v63 = vor.u32 %v2100_v59, %v1824_v61  ;;  %v1791_v51 = vor.u32 %v2093_v49, %v1790_v48  ;;  %v1888_v59 = vld [vmem:[#allocation5 + $0x48] sm:$0xf0] }
  0x50   : > { %882 = vmatpush.bf16.msrb.mxu2 %v1754_v2  ;;  %v2098_v2 = vld [vmem:[#allocation5 + $0xb4] sm:$0xf]  ;;  %v1891_v61 = vor.u32 %v2084_v58, %v1888_v59  ;;  %v1952_v48 = vld [vmem:[#allocation5 + $0x148] sm:$0xf0]  ;;  %v2076_v58 = vld [vmem:[#allocation5 + $0x4] sm:$0xf] }
  0x51   : > { %1077 = vmatpush.bf16.msra.mxu0 %v1827_v63  ;;  %v2123_v63 = vld [vmem:[#allocation5 + $0x174] sm:$0xf0]  ;;  %v1856_v59 = vld [vmem:[#allocation5 + $0x8] sm:$0xf0] }
  0x52   : > { %1063 = vmatpush.bf16.msrb.mxu3 %v1831_v54  ;;  %v2085_v54 = vld [vmem:[#allocation5 + $0x44] sm:$0xf0] }
  0x53   : > { %870 = vmatpush.bf16.msrb.mxu1 %v1742_v5  ;;  %v1910_v5 = vld [vmem:[#allocation5 + $0x70] sm:$0xf]  ;;  %v1887_v57 = vor.u32 %v2085_v54, %v1886_v53 }
  0x54   : > { %883 = vmatpush.bf16.msrb.mxu2 %v1746_v8  ;;  %v1819_v8 = vor.u32 %v2098_v2, %v1816_v4  ;;  %v1911_v9 = vor.u32 %v2091_v6, %v1910_v5  ;;  %v1979_v4 = vor.u32 %v2122_v0, %v1976_v1  ;;  %v1878_v5 = vld [vmem:[#allocation5 + $0x30] sm:$0xf]  ;;  %v2083_v6 = vld [vmem:[#allocation5 + $0x34] sm:$0xf0]  ;;  %v2114_v1 = vld [vmem:[#allocation5 + $0x134] sm:$0xf] }
  0x56   : > { %1064 = vmatpush.bf16.msrb.mxu3 %v1823_v60  ;;  %1078 = vmatpush.bf16.msra.mxu0 %v1819_v8  ;;  %v1974_v60 = vld [vmem:[#allocation5 + $0x170] sm:$0xf]  ;;  %v2082_v8 = vld [vmem:[#allocation5 + $0x34] sm:$0xf] }
  0x57   : > { %871 = vmatpush.bf16.msrb.mxu1 %v1734_v13 }
  0x58   : > { %884 = vmatpush.bf16.msrb.mxu2 %v1738_v14  ;;  %v1806_v14 = vld [vmem:[#allocation5 + $0xa0] sm:$0xf] }
  0x59   : > { %v1807_v17 = vor.u32 %v2097_v15, %v1806_v14  ;;  %v1883_v14 = vor.u32 %v2082_v8, %v1880_v10  ;;  %v2112_v8 = vld [vmem:[#allocation5 + $0x124] sm:$0xf] }
  0x5a   : > { %1065 = vmatpush.bf16.msrb.mxu3 %v1815_v3  ;;  %v1975_v3 = vor.u32 %v2123_v63, %v1974_v60  ;;  %v1942_v60 = vld [vmem:[#allocation5 + $0x130] sm:$0xf]  ;;  %v1859_v63 = vor.u32 %v2076_v58, %v1856_v59 }
  0x5b   : > { %872 = vmatpush.bf16.msrb.mxu1 %v1726_v19  ;;  %v1902_v19 = vld [vmem:[#allocation5 + $0x60] sm:$0xf] }
  0x5c   : > { %885 = vmatpush.bf16.msrb.mxu2 %v1730_v20  ;;  %v2089_v20 = vld [vmem:[#allocation5 + $0x64] sm:$0xf0] }
  0x5d   : > { %v1903_v23 = vor.u32 %v2089_v20, %v1902_v19 }
  0x5e   : > { %1066 = vmatpush.bf16.msrb.mxu3 %v1807_v17  ;;  %v1968_v17 = vld [vmem:[#allocation5 + $0x168] sm:$0xf0] }
  0x94   : > { %v2512_v25 = vpop.permute.xlu0 %512 }
  0xa0   : > { %v505_v24 = vpop.f32.mrf.mxu0 }
  0xa1   : > { %v2514_v26 = vadd.f32 %v2199_v22, %v505_v24  ;;  %v1811_v22 = vor.u32 %v2096_v16, %v1808_v18  ;;  %v2088_v24 = vld [vmem:[#allocation5 + $0x64] sm:$0xf]  ;;  %v1870_v18 = vld [vmem:[#allocation5 + $0x20] sm:$0xf] }
  0xa2   : > { %v2120_v16 = vld [vmem:[#allocation5 + $0x164] sm:$0xf] }
  0xa3   : > { %v515_v27 = vmul.f32 %v2512_v25, %v2514_v26  ;;  %1079 = vmatpush.bf16.msra.mxu0 %v1811_v22  ;;  %v1971_v20 = vor.u32 %v2120_v16, %v1968_v17  ;;  %v2080_v22 = vld [vmem:[#allocation5 + $0x24] sm:$0xf]  ;;  %v2110_v16 = vld [vmem:[#allocation5 + $0x114] sm:$0xf]  ;;  %v1928_v17 = vld [vmem:[#allocation5 + $0x118] sm:$0xf0] }
  0xa5   : > { %v570_v30 = vpack.c.bf16 %v515_v27, %v515_v27  ;;  %v516_v31 = vrot.slane %v515_v27, 7  ;;  %v518_v35 = vrot.slane %v515_v27, 1  ;;  %v1904_v27 = vld [vmem:[#allocation5 + $0x68] sm:$0xf0] }
  0xa6   : > { %v1907_v28 = vor.u32 %v2088_v24, %v1904_v27 }
  0xa7   : > { %661 = vmatmul.bf16.vlgmr.msra.gmra.mxu1 %v570_v30  ;;  %674 = vmatmul.bf16.vlgmr.msra.gmra.mxu2 %v570_v30  ;;  %v517_v32 = vmul.f32 %v2518_v29, %v516_v31  ;;  %v519_v37 = vmul.f32 %v2521_v36, %v518_v35  ;;  %v1798_v31 = vld [vmem:[#allocation5 + $0x90] sm:$0xf]  ;;  %v1800_v35 = vld [vmem:[#allocation5 + $0x98] sm:$0xf0] }
  0xa8   : > { %v507_v33 = vpop.f32.mrf.mxu0  ;;  %1167 = vmatpush.bf16.msra.mxu1 %v1911_v9  ;;  %1180 = vmatpush.bf16.msra.mxu2 %v1915_v12  ;;  %v1879_v9 = vor.u32 %v2083_v6, %v1878_v5  ;;  %v2121_v12 = vld [vmem:[#allocation5 + $0x164] sm:$0xf0]  ;;  %v1934_v5 = vld [vmem:[#allocation5 + $0x120] sm:$0xf] }
  0xa9   : > { %v571_v34 = vpack.c.bf16 %v517_v32, %v517_v32  ;;  %v572_v38 = vpack.c.bf16 %v519_v37, %v519_v37  ;;  %v2095_v32 = vld [vmem:[#allocation5 + $0x94] sm:$0xf0]  ;;  %v2094_v33 = vld [vmem:[#allocation5 + $0x94] sm:$0xf]  ;;  %v1894_v37 = vld [vmem:[#allocation5 + $0x50] sm:$0xf]  ;;  %v1967_v15 = vor.u32 %v2121_v12, %v1966_v11 }
  0xaa   : > { %v1803_v41 = vor.u32 %v2094_v33, %v1800_v35  ;;  %v1960_v35 = vld [vmem:[#allocation5 + $0x158] sm:$0xf0]  ;;  %v2113_v6 = vld [vmem:[#allocation5 + $0x124] sm:$0xf0]  ;;  %v1936_v11 = vld [vmem:[#allocation5 + $0x128] sm:$0xf0] }
  0xab   : > { %767 = vmatmul.bf16.vlgmr.msra.gmra.mxu3 %v571_v34  ;;  %780 = vmatmul.bf16.vlgmr.msrb.gmra.mxu0 %v571_v34  ;;  %v1799_v34 = vor.u32 %v2095_v32, %v1798_v31  ;;  %v2119_v31 = vld [vmem:[#allocation5 + $0x154] sm:$0xf0]  ;;  %v2118_v32 = vld [vmem:[#allocation5 + $0x154] sm:$0xf]  ;;  %v1935_v10 = vor.u32 %v2113_v6, %v1934_v5  ;;  %v1939_v12 = vor.u32 %v2112_v8, %v1936_v11 }
  0xac   : > { %1168 = vmatpush.bf16.msra.mxu1 %v1903_v23  ;;  %1181 = vmatpush.bf16.msra.mxu2 %v1907_v28  ;;  %v1872_v23 = vld [vmem:[#allocation5 + $0x28] sm:$0xf0]  ;;  %v1958_v28 = vld [vmem:[#allocation5 + $0x150] sm:$0xf] }
  0xad   : > { %1067 = vmatpush.bf16.msrb.mxu3 %v1799_v34  ;;  %1080 = vmatpush.bf16.msra.mxu0 %v1803_v41  ;;  %v1875_v34 = vor.u32 %v2080_v22, %v1872_v23  ;;  %v2078_v41 = vld [vmem:[#allocation5 + $0x14] sm:$0xf]  ;;  %v2108_v22 = vld [vmem:[#allocation5 + $0x104] sm:$0xf]  ;;  %v1920_v23 = vld [vmem:[#allocation5 + $0x108] sm:$0xf0] }
  0xb0   : > { %1182 = vmatpush.bf16.msra.mxu2 %v1899_v46  ;;  %v2117_v46 = vld [vmem:[#allocation5 + $0x144] sm:$0xf0] }
  0xb1   : > { %1068 = vmatpush.bf16.msrb.mxu3 %v1791_v51  ;;  %1081 = vmatpush.bf16.msra.mxu0 %v1795_v56  ;;  %v1951_v52 = vor.u32 %v2117_v46, %v1950_v43  ;;  %v1854_v56 = vld [vmem:[#allocation5] sm:$0xf] }
  0xb4   : > { %1183 = vmatpush.bf16.msra.mxu2 %v1891_v61  ;;  %v2115_v61 = vld [vmem:[#allocation5 + $0x134] sm:$0xf0] }
  0xb5   : > { %1273 = vmatpush.bf16.msra.mxu3 %v1975_v3  ;;  %1286 = vmatpush.bf16.msrb.mxu0 %v1979_v4  ;;  %v1943_v0 = vor.u32 %v2115_v61, %v1942_v60  ;;  %v922_v61 = vld [vmem:[%s2634_s7] sm:$0x3] }
  0xb7   : > { %873 = vmatmul.bf16.vlgmr.msrb.gmra.mxu1 %v572_v38  ;;  %886 = vmatmul.bf16.vlgmr.msrb.gmra.mxu2 %v572_v38  ;;  %v2087_v38 = vld [vmem:[#allocation5 + $0x54] sm:$0xf0] }
  0xb8   : > { %v1895_v42 = vor.u32 %v2087_v38, %v1894_v37  ;;  %1184 = vmatpush.bf16.msra.mxu2 %v1883_v14  ;;  %v1862_v37 = vld [vmem:[#allocation5 + $0x10] sm:$0xf]  ;;  %v2079_v38 = vld [vmem:[#allocation5 + $0x14] sm:$0xf0] }
  0xb9   : > { %1274 = vmatpush.bf16.msra.mxu3 %v1967_v15  ;;  %1287 = vmatpush.bf16.msrb.mxu0 %v1971_v20  ;;  %v1863_v49 = vor.u32 %v2079_v38, %v1862_v37  ;;  %v1926_v14 = vld [vmem:[#allocation5 + $0x110] sm:$0xf]  ;;  %v2111_v15 = vld [vmem:[#allocation5 + $0x114] sm:$0xf0]  ;;  %v1918_v20 = vld [vmem:[#allocation5 + $0x100] sm:$0xf] }
  0xba   : > { %1169 = vmatpush.bf16.msra.mxu1 %v1895_v42  ;;  %v1864_v42 = vld [vmem:[#allocation5 + $0x18] sm:$0xf0] }
  0xbb   : > { %v1867_v51 = vor.u32 %v2078_v41, %v1864_v42 }
  0xbc   : > { %1185 = vmatpush.bf16.msra.mxu2 %v1875_v34  ;;  %v894_v34 = vperm.slane %v2535_v40, 0 }
  0xbe   : > { %1170 = vmatpush.bf16.msra.mxu1 %v1887_v57  ;;  %v2077_v57 = vld [vmem:[#allocation5 + $0x4] sm:$0xf0] }
  0xc0   : > { %1186 = vmatpush.bf16.msra.mxu2 %v1867_v51 }
  0xc2   : > { %1171 = vmatpush.bf16.msra.mxu1 %v1879_v9 }
  0xc4   : > { %1187 = vmatpush.bf16.msra.mxu2 %v1859_v63  ;;  %v2126_v63 = vld [vmem:[%s2635_s8 + $0x10] sm:$0xff] }
 0x124   : > { %v2524_v62 = vpop.f32.mrf.mxu1 }
 0x128   : > { %v2526_v7 = vpop.f32.mrf.mxu0 }
 0x12a   : > { %v2528_v13 = vpop.f32.mrf.mxu2 }
 0x12b   : > { %v782_v19 = vadd.f32 %v2526_v7, %v2528_v13  ;;  %v1959_v7 = vor.u32 %v2119_v31, %v1958_v28  ;;  %v1963_v13 = vor.u32 %v2118_v32, %v1960_v35  ;;  %v1923_v28 = vor.u32 %v2108_v22, %v1920_v23 }
 0x12c   : > { %v664_v21 = vpop.f32.mrf.mxu1  ;;  %v1302_v22 = vperm.slane %v922_v61, 0 }
 0x12d   : > { %v2081_v21 = vld [vmem:[#allocation5 + $0x24] sm:$0xf0]  ;;  %1275 = vmatpush.bf16.msra.mxu3 %v1959_v7  ;;  %1288 = vmatpush.bf16.msrb.mxu0 %v1963_v13 }
 0x12e   : > { %v2530_v30 = vpop.f32.mrf.mxu3  ;;  %v1871_v27 = vor.u32 %v2081_v21, %v1870_v18  ;;  %v1927_v18 = vor.u32 %v2111_v15, %v1926_v14  ;;  %v2109_v21 = vld [vmem:[#allocation5 + $0x104] sm:$0xf0] }
 0x12f   : > { %v769_v32 = vadd.f32 %v2530_v30, %v2524_v62  ;;  %v2133_v14 = vld [vmem:[%s2637_s10 + $0x8] sm:$0xff] }
 0x130   : > { %v783_v39 = vpop.f32.mrf.mxu0  ;;  %1172 = vmatpush.bf16.msra.mxu1 %v1871_v27  ;;  %v1919_v27 = vor.u32 %v2109_v21, %v1918_v20  ;;  %1445 = vmatpush.bf16.msrb.mxu2 %v2133_v14 }
 0x131   : > { %1276 = vmatpush.bf16.msra.mxu3 %v1951_v52  ;;  %v2131_v52 = vld [vmem:[%s2635_s8 + $0x38] sm:$0xff] }
 0x132   : > { %v677_v47 = vpop.f32.mrf.mxu2 }
 0x133   : > { %v2116_v47 = vld [vmem:[#allocation5 + $0x144] sm:$0xf] }
 0x134   : > { %v2538_v55 = vpop.f32.mrf.mxu1  ;;  %v1955_v53 = vor.u32 %v2116_v47, %v1952_v48  ;;  %1173 = vmatpush.bf16.msra.mxu1 %v1863_v49 }
 0x135   : > { %1277 = vmatpush.bf16.msra.mxu3 %v1943_v0  ;;  %v891_v37 = vadd.f32 %v2538_v55, %v769_v32 }
 0x136   : > { %v770_v2 = vpop.f32.mrf.mxu3  ;;  %1289 = vmatpush.bf16.msrb.mxu0 %v1955_v53  ;;  %v2130_v53 = vld [vmem:[%s2635_s8 + $0x30] sm:$0xff] }
 0x137   : > { %v1944_v2 = vld [vmem:[#allocation5 + $0x138] sm:$0xf0]  ;;  %v898_v41 = vadd.f32 %v894_v34, %v891_v37 }
 0x138   : > { %v1947_v3 = vor.u32 %v2114_v1, %v1944_v2  ;;  %v1303_v2 = vperm.slane %v922_v61, 1 }
 0x139   : > { %1278 = vmatpush.bf16.msra.mxu3 %v1935_v10 }
 0x13a   : > { %v887_v24 = vpop.f32.mrf.mxu2  ;;  %1290 = vmatpush.bf16.msrb.mxu0 %v1947_v3 }
 0x13b   : > { %v892_v33 = vadd.f32 %v887_v24, %v782_v19  ;;  %v1931_v19 = vor.u32 %v2110_v16, %v1928_v17 }
 0x13c   : > { %v876_v39 = vpop.f32.mrf.mxu1 }
 0x13d   : > { %v899_v44 = vadd.f32 %v895_v45, %v892_v33  ;;  %v1855_v45 = vor.u32 %v2077_v57, %v1854_v56  ;;  %1279 = vmatpush.bf16.msra.mxu3 %v1927_v18  ;;  %v2128_v56 = vld [vmem:[%s2635_s8 + $0x20] sm:$0xff] }
 0x13e   : > { %1291 = vmatpush.bf16.msrb.mxu0 %v1939_v12 }
 0x13f   : > { %v1787_v50 = vmul.f32 -1.442695, %v899_v44  ;;  %1174 = vmatpush.bf16.msra.mxu1 %v1855_v45  ;;  %v2127_v45 = vld [vmem:[%s2635_s8 + $0x18] sm:$0xff] }
 0x141   : > { %2202 = vpow2.f32 %v1787_v50  ;;  %1280 = vmatpush.bf16.msra.mxu3 %v1919_v27 }
 0x142   : > { %v889_v54 = vpop.f32.mrf.mxu2  ;;  %1292 = vmatpush.bf16.msrb.mxu0 %v1931_v19 }
 0x143   : > { %1399 = vmatpush.bf16.msrb.mxu1 %v2131_v52  ;;  %v2129_v54 = vld [vmem:[%s2635_s8 + $0x28] sm:$0xff] }
 0x146   : > { %1293 = vmatpush.bf16.msrb.mxu0 %v1923_v28 }
 0x147   : > { %v2203_v4 = vpop.eup %2202  ;;  %1400 = vmatpush.bf16.msrb.mxu1 %v2130_v53 }
 0x148   : > { %v903_v9 = vadd.f32 1.0, %v2203_v4  ;;  %v2125_v4 = vld [vmem:[%s2635_s8 + $0x8] sm:$0xff] }
 0x14a   : > { %2204 = vrcp.f32 %v903_v9  ;;  %v915_v35 = vand.u32 2147483648, %v903_v9  ;;  %v913_v39 = vand.u32 2147483647, %v903_v9  ;;  %vm909_vm4 = vweird.f32 %v903_v9 }
 0x14b   : > { %1401 = vmatpush.bf16.msrb.mxu1 %v2129_v54 }
 0x14c   : > { %v916_v13 = vor.u32 1.1754944e-38, %v915_v35  ;;  %vm914_vm6 = vcmp.eq.f32.partialorder %v913_v39, 8.507059e+37 }
 0x14f   : > { %1402 = vmatpush.bf16.msrb.mxu1 %v2128_v56 }
 0x150   : > { %v2205_v24 = vpop.eup %2204 }
 0x151   : > { %v905_v31 = vmul.f32 %v2205_v24, %v903_v9  ;;  %vm910_vm3 = vweird.f32 %v2205_v24  ;;  %v2124_v9 = vld [vmem:[%s2635_s8] sm:$0xff] }
 0x152   : > { %vm911_vm5 = vmor %vm909_vm4, %vm910_vm3 }
 0x153   : > { %v906_v33 = vsub.f32 1.0, %v905_v31  ;;  %1403 = vmatpush.bf16.msrb.mxu1 %v2127_v45 }
 0x155   : > { %v907_v38 = vmul.f32 %v2205_v24, %v906_v33 }
 0x157   : > { %v908_v7 = vadd.f32 %v2205_v24, %v907_v38  ;;  %1404 = vmatpush.bf16.msrb.mxu1 %v2126_v63 }
 0x159   : > { %v912_v42 = vsel %vm911_vm5, %v2205_v24, %v908_v7 }
 0x15a   : > { %v917_v43 = vsel %vm914_vm6, %v916_v13, %v912_v42  ;;  %v2132_v13 = vld [vmem:[%s2637_s10] sm:$0xff] }
 0x15b   : > { %v919_v62 = vmul.f32 %v917_v43, %v898_v41  ;;  %1405 = vmatpush.bf16.msrb.mxu1 %v2125_v4  ;;  %1446 = vmatpush.bf16.msrb.mxu2 %v2132_v13  ;;  %v2200_v41 = vld [vmem:[%s2636_s9] ss:$0 sm:$0xff] }
 0x15c   : > { %v2214_v43 = vld [vmem:[%s2505_s27] sm:$0xf]  ;;  %s449_s27 = sand.u32 1, %s2337_s22  }
 0x15d   : > { %v920_v30 = vadd.f32 %v919_v62, %v2514_v26  ;;  %v463_v62 = vunpack.c.l.bf16 %v2214_v43  ;;  %s1581_s28 = sshll.u32 %s449_s27, 2  ;;  %s1465_s19 = scalar_lea.sflag [#allocation4], %s449_s27 }
 0x15e   : > { %s451_s15 = scalar_lea.vmem [#allocation7], %s1581_s28 }
 0x15f   : > { %v921_v40 = vmul.f32 0.70710677, %v920_v30  ;;  %1406 = vmatpush.bf16.msrb.mxu1 %v2124_v9  ;;  %s1477_s17 = sshll.u32 %s451_s15, 4  ;;  %s1478_s17 = int_to_ptr.vmem [resolvable:$true] %s1477_s17 }
 0x161   : > { %v923_v44 = vmul.f32 %v921_v40, %v2512_v25 }
 0x163   : > { %v978_v46 = vpack.c.bf16 %v923_v44, %v923_v44  ;;  %v924_v47 = vrot.slane %v923_v44, 7  ;;  %v926_v49 = vrot.slane %v923_v44, 1 }
 0x165   : > { %1069 = vmatmul.bf16.vlgmr.msrb.gmra.mxu3 %v978_v46  ;;  %1082 = vmatmul.bf16.vlgmr.msra.gmra.mxu0 %v978_v46  ;;  %v925_v55 = vmul.f32 %v2518_v29, %v924_v47  ;;  %v927_v50 = vmul.f32 %v2521_v36, %v926_v49 }
 0x167   : > { %v979_v48 = vpack.c.bf16 %v925_v55, %v925_v55  ;;  %v980_v51 = vpack.c.bf16 %v927_v50, %v927_v50  ;;  %v2201_v55 = vld [vmem:[%s2638_s11] ss:$0 sm:$0xff] }
 0x169   : > { %1175 = vmatmul.bf16.vlgmr.msra.gmra.mxu1 %v979_v48  ;;  %1188 = vmatmul.bf16.vlgmr.msra.gmra.mxu2 %v979_v48 }
 0x175   : > { %1281 = vmatmul.bf16.vlgmr.msra.gmra.mxu3 %v980_v51  ;;  %1294 = vmatmul.bf16.vlgmr.msrb.gmra.mxu0 %v980_v51 }
 0x1e2   : > { %v1083_v29 = vpop.f32.mrf.mxu0 }
 0x1e6   : > { %v1176_v36 = vpop.f32.mrf.mxu1 }
 0x1e8   : > { %v1070_v57 = vpop.f32.mrf.mxu3 }
 0x1e9   : > { %v1177_v20 = vadd.f32 %v1176_v36, %v1070_v57 }
 0x1ea   : > { %v1085_v58 = vpop.f32.mrf.mxu0 }
 0x1ec   : > { %v1189_v59 = vpop.f32.mrf.mxu2 }
 0x1ed   : > { %v1190_v1 = vadd.f32 %v1189_v59, %v1083_v29 }
 0x1ee   : > { %v1178_v60 = vpop.f32.mrf.mxu1 }
 0x1f0   : > { %v1072_v0 = vpop.f32.mrf.mxu3 }
 0x1f2   : > { %v1295_v3 = vpop.f32.mrf.mxu0 }
 0x1f3   : > { %v1300_v5 = vadd.f32 %v1295_v3, %v1190_v1 }
 0x1f4   : > { %v1191_v6 = vpop.f32.mrf.mxu2 }
 0x1f5   : > { %v1307_v8 = vadd.f32 %v1303_v2, %v1300_v5 }
 0x1f7   : > { %v1980_v10 = vmul.f32 -1.442695, %v1307_v8 }
 0x1f8   : > { %v1282_v11 = vpop.f32.mrf.mxu3 }
 0x1f9   : > { %2206 = vpow2.f32 %v1980_v10  ;;  %v1299_v24 = vadd.f32 %v1282_v11, %v1177_v20 }
 0x1fa   : > { %v1297_v12 = vpop.f32.mrf.mxu0 }
 0x1fb   : > { %v1306_v33 = vadd.f32 %v1302_v22, %v1299_v24 }
 0x1ff   : > { %v2207_v15 = vpop.eup %2206 }
 0x200   : > { %v1311_v16 = vadd.f32 1.0, %v2207_v15  ;;  %v1284_v17 = vpop.f32.mrf.mxu3 }
 0x202   : > { %2208 = vrcp.f32 %v1311_v16  ;;  %v1323_v23 = vand.u32 2147483648, %v1311_v16  ;;  %v1321_v28 = vand.u32 2147483647, %v1311_v16  ;;  %vm1317_vm8 = vweird.f32 %v1311_v16 }
 0x204   : > { %v1324_v32 = vor.u32 1.1754944e-38, %v1323_v23  ;;  %vm1322_vm10 = vcmp.eq.f32.partialorder %v1321_v28, 8.507059e+37 }
 0x208   : > { %v2209_v18 = vpop.eup %2208 }
 0x209   : > { %v1313_v19 = vmul.f32 %v2209_v18, %v1311_v16  ;;  %vm1318_vm7 = vweird.f32 %v2209_v18 }
 0x20a   : > { %vm1319_vm9 = vmor %vm1317_vm8, %vm1318_vm7 }
 0x20b   : > { %v1314_v21 = vsub.f32 1.0, %v1313_v19 }
 0x20d   : > { %v1315_v27 = vmul.f32 %v2209_v18, %v1314_v21 }
 0x20f   : > { %v1316_v31 = vadd.f32 %v2209_v18, %v1315_v27 }
 0x211   : > { %v1320_v34 = vsel %vm1319_vm9, %v2209_v18, %v1316_v31 }
 0x212   : > { %v1325_v35 = vsel %vm1322_vm10, %v1324_v32, %v1320_v34 }
 0x213   : > { %v1327_v37 = vmul.f32 %v1325_v35, %v1306_v33 }
 0x215   : > { %v1328_v38 = vadd.f32 %v1327_v37, %v2514_v26 }
 0x217   : > { %v1329_v39 = vmul.f32 0.70710677, %v1328_v38 }
 0x219   : > { %v1347_v7 = vpack.c.bf16 %v1329_v39, %v1329_v39 }
 0x21b   : > { %1407 = vmatmul.bf16.vlgmr.msrb.gmra.mxu1 %v1347_v7 }
 0x298   : > { %v1408_v42 = vpop.f32.mrf.mxu1 }
 0x299   : > { %v1409_v30 = vadd.f32 %v2200_v41, %v1408_v42 }
 0x29b   : > { %v1412_v40 = vmul.f32 %v1409_v30, %v2512_v25 }
 0x29d   : > { %v1413_v44 = vadd.f32 %v1412_v40, %v463_v62 }
 0x29f   : > { %v1414_v26 = vmul.f32 0.70710677, %v1413_v44 }
 0x2a0   : > { %v1410_v46 = vpop.f32.mrf.mxu1 }
 0x2a1   : > { %v1420_v47 = vpack.c.bf16 %v1414_v26, %v1414_v26 }
 0x2a3   : > { %2021 = vmatmul.msk.bf16.vlgmr.msrb.gmra.mxu2 %vm492_vm0, %v1420_v47 }
 0x326   : > { %v1448_v48 = vpop.f32.mrf.mxu2 }
 0x327   : > { %v1449_v49 = vadd.f32 %v2201_v55, %v1448_v48 }
 0x329   : > { %1452 = vmax.xlane.f32.xlu0 %v1449_v49 }
 0x32e   : > { %v1450_v50 = vpop.f32.mrf.mxu2 }
 0x39c   : > { %v1453_v51 = vpop.xlane.xlu0 %1452 }
 0x39d   : > { %v1454_v52 = vsub.f32 %v1449_v49, %v1453_v51 }
 0x39f   : > { %v1455_v53 = vmul.f32 1.442695, %v1454_v52 }
 0x3a1   : > { %2210 = vpow2.f32 %v1455_v53 }
 0x3a7   : > { %v2211_v25 = vpop.eup %2210 }
 0x3a8   : > { %1457 = vadd.xlane.f32.xlu1 %v2211_v25 }
 0x41b   : > { %v1458_v29 = vpop.xlane.xlu1 %1457 }
 0x41c   : > { %2212 = vlog2.f32 %v1458_v29 }
 0x422   : > { %v2213_v54 = vpop.eup %2212 }
 0x423   : > { %v1460_v36 = vmul.f32 0.6931472, %v2213_v54 }
 0x425   : > { %v1461_v56 = vsub.f32 %v1454_v52, %v1460_v36 }
 0x427   : > { %v1462_v57 = vpack.c.bf16 %v1461_v56, %v1461_v56 }
 0x429   : > { %1463 = vst [vmem:[%s451_s15] sm:$0xf] %v1462_v57 }
 0x42a   : > { %2302 = shalt.err (!%p2299_p8)
}
 0x42b   : > { %2142 = dma.vmem_to_hbm [thread:$0]  (%p2456_p5), %s1478_s17, 64, %s1480_s18, %s1465_s19  }
 0x42c PF: > { %p2159_p9 = scmp.ge.s32.totalorder %s2345_s24, 2  ;;  %s1491_s27 = sand.u32 1, %s2333_s21  }
 0x42d   : > { %s1492_s30 = scalar_lea.sflag [#allocation4], %s1491_s27 }
 0x42e   : > { %p2152_p10 = pnand %p2159_p9, %p2460_p6 }
 0x430   : > { %p2153_p11 = pneg %p2152_p10 }
 0x432   : > { %2328 = dma.done.wait (%p2153_p11), %s1492_s30, 64  }
 0x433   : > { %2330 = vsyncadd (%p2153_p11), %s1492_s30, 4294967232  ;;  %s2649_s24 = sld [smem:[#allocation12_spill]]  ;;  %s2652_s21 = smov %s2337_s22 }
 0x434   : > { %s2650_s15 = sld [smem:[#allocation11_spill]] }
 0x435   : > { %s2651_s23 = sld [smem:[#allocation13_spill]] }
 0x439   : > { %p24_p12 = scmp.ge.s32.totalorder %s2649_s24, 4  }
 0x43a   : > { %s2653_s22 = smov %s2650_s15 }
 0x43b   :  { %26 = sbr.rel (!%p24_p12) target bundleno = 5 (0x5), region = 119 }
 0x440   :  { %1498 = vsyncpa [#allocation3], 1 }
 0x441   :  { %1500 = vsyncpa [#allocation3 + $0x1], 1 }
 0x442   :  { %1501 = vsyncpa [#allocation6], 1 }
 0x443   :  { %1502 = vsyncpa [#allocation4], 1 }
 0x444   :  { %1504 = vsyncpa [#allocation4 + $0x1], 1 }

</bundles_post_ra>
